<compile_context>
chip_gen: v6e
topology: v6e:2x2x1
jax: 0.10.0
libtpu: 0.0.40
codegen_flags: <defaults>
</compile_context>

<pallas_src>
import jax
import jax.numpy as jnp
from jax.experimental import pallas as pl
from jax.experimental.pallas import tpu as pltpu


def attn_scores_kernel(x_ref, w1_ref, bw_ref, b2_ref, s_ref):
    """One row tile per grid step.

    x_ref : (Rt, D)         instance features (Rt rows = Rt instances)
    w1_ref: (D, L)          first Linear weight, pre-transposed (x @ W1)
    bw_ref: (2, L)          row 0 = b1, row 1 = w2 (second Linear weight row)
    b2_ref: (1, 1) in SMEM  second Linear bias (scalar)
    s_ref : (Rt//128, 128)  unnormalized scores, lane-dense layout
    """
    # First Linear + tanh: one large-M MXU matmul (f32 accumulate), f32 tanh on EUP.
    h = jnp.tanh(
        jnp.dot(x_ref[...], w1_ref[...], preferred_element_type=jnp.float32)
        + bw_ref[0:1, :]
    )  # (Rt, L) f32
    # Second Linear (L -> 1): VPU multiply + XLU lane reduce, then scalar bias.
    # TODO(synk): on v6e/v7x a bf16 tanh would halve EUP cost if it ever binds.
    s = jnp.sum(h * bw_ref[1:2, :], axis=-1) + b2_ref[0, 0]  # (Rt,) f32
    s_ref[...] = s.reshape(s_ref.shape).astype(s_ref.dtype)


def _round_up(a, m):
    return ((a + m - 1) // m) * m


def attn_forward(bag, w1, b1, w2, b2, *, target_block_bytes=4 * 1024 * 1024,
                 stream_bf16=False):
    """Pallas implementation of Attn.forward.

    bag: (B, I, D) or (I, D); w1: (L, D); b1: (L,); w2: (1, L); b2: (1,)
    (PyTorch nn.Linear weight layout.)
    Returns (attn_scores, bag) with attn_scores (B, I, 1) / (I, 1), matching the module.
    """
    bag = jnp.asarray(bag)
    unbatched = bag.ndim == 2
    x3 = bag[None] if unbatched else bag
    B, I, D = x3.shape
    L = int(jnp.asarray(w1).shape[0])
    rows = B * I

    out_dtype = jnp.promote_types(x3.dtype, jnp.asarray(w1).dtype)
    compute_dtype = jnp.bfloat16 if stream_bf16 else out_dtype
    itemsize = jnp.dtype(compute_dtype).itemsize

    # --- Row tile sizing (HBM-streaming bound: make x blocks multi-MiB) -----------
    r_from_bytes = max(1, int(target_block_bytes) // max(1, D * itemsize))
    R_tile = max(1024, (r_from_bytes // 1024) * 1024)     # multiple of 1024 rows
    R_tile = min(R_tile, _round_up(rows, 1024))           # don't pad far beyond need
    if rows > 1024:                                        # >=2 blocks -> v7x dual TC
        R_tile = min(R_tile, _round_up(-(-rows // 2), 1024))
    R_pad = _round_up(rows, R_tile)
    n_blocks = R_pad // R_tile
    SUB = R_tile // 128                                    # sublane rows of out tile
    # TODO(synk): for extremely large n_in (x block >> 8 MiB) the D axis would also
    # need tiling with a K-accumulator; typical MIL feature dims don't require it.

    # --- Parameter prep (plain x @ W layout, packed residents) --------------------
    x2 = x3.reshape(rows, D).astype(compute_dtype)
    if R_pad != rows:
        x2 = jnp.pad(x2, ((0, R_pad - rows), (0, 0)))
    w1t = jnp.asarray(w1).T.reshape(D, L).astype(compute_dtype)
    bw = jnp.concatenate(
        [jnp.asarray(b1, jnp.float32).reshape(1, L),
         jnp.asarray(w2, jnp.float32).reshape(1, L)], axis=0)      # (2, L) resident
    b2r = jnp.asarray(b2, jnp.float32).reshape(1, 1)               # scalar in SMEM

    # --- VMEM budget: actual buffer sum, capped for v7x (64 MiB physical) ---------
    x_block_bytes = R_tile * D * itemsize
    out_block_bytes = SUB * 128 * 4
    w1_bytes = D * L * itemsize
    bw_bytes = 2 * L * 4
    tmp_bytes = x_block_bytes + 3 * R_tile * L * 4          # in-kernel value temporaries
    need = 2 * (x_block_bytes + out_block_bytes + w1_bytes + bw_bytes) + tmp_bytes + (2 << 20)
    vmem_limit = int(min(48 << 20, max(32 << 20, need)))

    scores2d = pl.pallas_call(
        attn_scores_kernel,
        out_shape=jax.ShapeDtypeStruct((R_pad // 128, 128), jnp.float32),
        grid_spec=pltpu.PrefetchScalarGridSpec(
            num_scalar_prefetch=0,
            grid=(n_blocks,),
            in_specs=[
                pl.BlockSpec((R_tile, D), lambda b: (b, 0)),   # row tile of x
                pl.BlockSpec((D, L), lambda b: (0, 0)),        # W1^T (resident)
                pl.BlockSpec((2, L), lambda b: (0, 0)),        # [b1; w2] (resident)
                pl.BlockSpec(memory_space=pltpu.MemorySpace.SMEM),  # b2 scalar
            ],
            out_specs=pl.BlockSpec((SUB, 128), lambda b: (b, 0)),   # lane-dense tile
        ),
        compiler_params=pltpu.CompilerParams(
            dimension_semantics=("parallel",),   # row-block axis shards across cores
            vmem_limit_bytes=vmem_limit,
        ),
    )(x2, w1t, bw, b2r)

    scores = scores2d.reshape(R_pad)[:rows].reshape(B, I, 1).astype(out_dtype)
    if unbatched:
        scores = scores[0]
    # TODO(synk): optional nn.Dropout branch of the module is a no-op at inference.
    return scores, bag


def reference_forward(bag, w1, b1, w2, b2):
    """Pure-JAX reference mirroring the PyTorch Attn.forward."""
    h = jnp.tanh(jnp.einsum("bid,ld->bil", bag, w1) + b1)   # (B, I, L)
    s = jnp.einsum("bil,ol->bio", h, w2) + b2               # (B, I, 1)
    return s, bag


if __name__ == "__main__":
    # Small, module-consistent shapes: batch=2, instances=8, n_in=32, n_latent=(32+1)//2=16.
    B, I, D = 2, 8, 32
    L = (D + 1) // 2

    key = jax.random.PRNGKey(0)
    k_bag, k_w1, k_b1, k_w2, k_b2 = jax.random.split(key, 5)

    bag = jax.random.normal(k_bag, (B, I, D), dtype=jnp.float32)
    # PyTorch nn.Linear weight layout: (out_features, in_features).
    w1 = jax.random.normal(k_w1, (L, D), dtype=jnp.float32) * 0.1
    b1 = jax.random.normal(k_b1, (L,), dtype=jnp.float32) * 0.1
    w2 = jax.random.normal(k_w2, (1, L), dtype=jnp.float32) * 0.1
    b2 = jax.random.normal(k_b2, (1,), dtype=jnp.float32) * 0.1

    ref_scores, _ = reference_forward(bag, w1, b1, w2, b2)

    # f32 path (exact-ish vs reference).
    attn_scores, x_out = attn_forward(bag, w1, b1, w2, b2)
    attn_scores = jax.block_until_ready(attn_scores)
    assert attn_scores.shape == (B, I, 1)
    assert jnp.allclose(attn_scores, ref_scores, atol=1e-5, rtol=1e-5), "score mismatch"
    assert x_out.shape == bag.shape and bool(jnp.array_equal(x_out, bag)), "x passthrough mismatch"

    # bf16-streaming path (HBM-bytes optimization; looser tolerance from bf16 x/W1).
    bf16_scores, _ = attn_forward(bag, w1, b1, w2, b2, stream_bf16=True)
    bf16_scores = jax.block_until_ready(bf16_scores)
    assert bf16_scores.shape == (B, I, 1)
    assert jnp.allclose(bf16_scores, ref_scores, atol=2e-2, rtol=2e-2), "bf16 score mismatch"

    print("KERNEL_OK")
</pallas_src>

<mosaic_0001>
module attributes {stable_mosaic.version = 11 : i64} {
  func.func @attn_scores_kernel(%arg0: i32, %arg1: memref<1024x32xf32, #tpu.memory_space<vmem>>, %arg2: memref<32x16xf32, #tpu.memory_space<vmem>>, %arg3: memref<2x16xf32, #tpu.memory_space<vmem>>, %arg4: memref<1x1xf32, #tpu.memory_space<smem>>, %arg5: memref<8x128xf32, #tpu.memory_space<vmem>>) attributes {dimension_semantics = [#tpu.dimension_semantics<parallel>], iteration_bounds = array<i64: 1>, scalar_prefetch = 0 : i64, scratch_operands = 0 : i64, tpu.core_type = #tpu.core_type<tc>, window_params = [{transform_indices = @transform_0, window_bounds = array<i64: 1024, 32>}, {pipeline_mode = #tpu.pipeline_mode<synchronous>, transform_indices = @transform_1, window_bounds = array<i64: 32, 16>}, {pipeline_mode = #tpu.pipeline_mode<synchronous>, transform_indices = @transform_2, window_bounds = array<i64: 2, 16>}, {transform_indices = @transform_3, window_bounds = array<i64: 1, 1>}, {transform_indices = @transform_4, window_bounds = array<i64: 8, 128>}]} {
    %c0 = arith.constant 0 : index
    %c0_0 = arith.constant 0 : index
    %0 = vector.load %arg1[%c0, %c0_0] : memref<1024x32xf32, #tpu.memory_space<vmem>>, vector<1024x32xf32>
    %c0_1 = arith.constant 0 : index
    %c0_2 = arith.constant 0 : index
    %1 = vector.load %arg2[%c0_1, %c0_2] : memref<32x16xf32, #tpu.memory_space<vmem>>, vector<32x16xf32>
    %cst = arith.constant dense<0.000000e+00> : vector<1024x16xf32>
    %2 = tpu.matmul %0, %1, %cst {dimension_numbers = #tpu.dot_dimension_numbers<[1], [0], [0], [1], [0, 0, 1, 1], [], []>} : vector<1024x32xf32>, vector<32x16xf32>, vector<1024x16xf32> -> vector<1024x16xf32>
    %c0_3 = arith.constant 0 : index
    %c0_4 = arith.constant 0 : index
    %3 = vector.load %arg3[%c0_3, %c0_4] : memref<2x16xf32, #tpu.memory_space<vmem>>, vector<1x16xf32>
    %4 = vector.broadcast %3 : vector<1x16xf32> to vector<1024x16xf32>
    %5 = arith.addf %2, %4 : vector<1024x16xf32>
    %6 = math.tanh %5 : vector<1024x16xf32>
    %c1 = arith.constant 1 : index
    %c0_5 = arith.constant 0 : index
    %7 = vector.load %arg3[%c1, %c0_5] : memref<2x16xf32, #tpu.memory_space<vmem>>, vector<1x16xf32>
    %8 = vector.broadcast %7 : vector<1x16xf32> to vector<1024x16xf32>
    %9 = arith.mulf %6, %8 : vector<1024x16xf32>
    %cst_6 = arith.constant dense<0.000000e+00> : vector<1024xf32>
    %10 = vector.multi_reduction <add>, %9, %cst_6 [1] : vector<1024x16xf32> to vector<1024xf32>
    %c0_7 = arith.constant 0 : index
    %c0_8 = arith.constant 0 : index
    %11 = memref.load %arg4[%c0_7, %c0_8] : memref<1x1xf32, #tpu.memory_space<smem>>
    %12 = vector.broadcast %11 : f32 to vector<1024xf32>
    %13 = arith.addf %10, %12 : vector<1024xf32>
    %14 = vector.shape_cast %13 : vector<1024xf32> to vector<8x128xf32>
    %c0_9 = arith.constant 0 : index
    %c0_10 = arith.constant 0 : index
    %15 = vector.load %arg5[%c0_9, %c0_10] : memref<8x128xf32, #tpu.memory_space<vmem>>, vector<8x128xf32>
    tpu.vector_store %arg5[%c0_9, %c0_10], %14 {strides = array<i32>} : memref<8x128xf32, #tpu.memory_space<vmem>>, vector<8x128xf32>,
    return
  }
  func.func @transform_0(%arg0: i32) -> (i32, i32) {
    %c0_i32 = arith.constant 0 : i32
    %c0_i32_0 = arith.constant 0 : i32
    return %arg0, %c0_i32 : i32, i32
  }
  func.func @transform_1(%arg0: i32) -> (i32, i32) {
    %c0_i32 = arith.constant 0 : i32
    %c0_i32_0 = arith.constant 0 : i32
    %c0_i32_1 = arith.constant 0 : i32
    return %c0_i32, %c0_i32_0 : i32, i32
  }
  func.func @transform_2(%arg0: i32) -> (i32, i32) {
    %c0_i32 = arith.constant 0 : i32
    %c0_i32_0 = arith.constant 0 : i32
    %c0_i32_1 = arith.constant 0 : i32
    return %c0_i32, %c0_i32_0 : i32, i32
  }
  func.func @transform_3(%arg0: i32) -> (i32, i32) {
    %c0_i32 = arith.constant 0 : i32
    %c0_i32_0 = arith.constant 0 : i32
    %c0_i32_1 = arith.constant 0 : i32
    return %c0_i32, %c0_i32_0 : i32, i32
  }
  func.func @transform_4(%arg0: i32) -> (i32, i32) {
    %c0_i32 = arith.constant 0 : i32
    %c0_i32_0 = arith.constant 0 : i32
    return %arg0, %c0_i32 : i32, i32
  }
}

</mosaic_0001>

<bundles_post_ra>
// kernel: tpu_custom_call.1
= control target key start
LH: loop header
LB: loop body
LE: loop exit
PB: predicated region body
PF: predicated region fallthrough
CT: control target
= control target key end

     0   :  { %vm156_vm0 = vcmask 261120   ;;  %s5193_s0 = inlined_call_operand.vmem [shape: f32[1024,32], index: 0, kind: input, shape index: {}]   ;;  %s5194_s1 = inlined_call_operand.vmem [shape: f32[32,16], index: 1, kind: input, shape index: {}]   ;;  %s5195_s2 = inlined_call_operand.vmem [shape: f32[2,16], index: 2, kind: input, shape index: {}]   ;;  %s5196_s3 = inlined_call_operand.<no memory space> [shape: f32[1,1], index: 3, kind: input, shape index: {}]   ;;  %s5197_s4 = inlined_call_operand.hbm [shape: f32[8,128], index: 4, kind: output, shape index: {}]  }
   0x1   :  { %v150_v0 = vld [vmem:[%s5194_s1 + $0x18] sm:$0xff]  ;;  %v149_v1 = vld [vmem:[%s5194_s1 + $0x10] sm:$0xff]  ;;  %v148_v2 = vld [vmem:[%s5194_s1 + $0x8] sm:$0xff] }
   0x2   :  { %3113 = vmatprep.subr.mxu0 %v150_v0  ;;  %3313 = vmatprep.subr.mxu1 %v150_v0  ;;  %v147_v3 = vld [vmem:[%s5194_s1] sm:$0xff]  ;;  %v20_v6 = vld [vmem:[%s5193_s0 + $0x8] sm:$0xff]  ;;  %v21_v8 = vld [vmem:[%s5193_s0 + $0x10] sm:$0xff] }
   0x3   :  { %3114 = vmatpush3.msra.mxu0 %v150_v0  ;;  %3317 = vmatpush3.msra.mxu1 %v150_v0  ;;  %v19_v4 = vld [vmem:[%s5193_s0] sm:$0xff]  ;;  %v84_v7 = vld [vmem:[%s5193_s0 + $0x208] sm:$0xff]  ;;  %v85_v9 = vld [vmem:[%s5193_s0 + $0x210] sm:$0xff] }
   0x4   :  { %3115 = vmatprep.subr.mxu0 %v149_v1  ;;  %3314 = vmatprep.subr.mxu1 %v149_v1  ;;  %v83_v5 = vld [vmem:[%s5193_s0 + $0x200] sm:$0xff]  ;;  %v22_v10 = vld [vmem:[%s5193_s0 + $0x18] sm:$0xff]  ;;  %v24_v14 = vld [vmem:[%s5193_s0 + $0x28] sm:$0xff] }
   0x5   :  { %3116 = vmatpush3.msra.mxu0 %v149_v1  ;;  %3318 = vmatpush3.msra.mxu1 %v149_v1  ;;  %v86_v11 = vld [vmem:[%s5193_s0 + $0x218] sm:$0xff]  ;;  %v23_v12 = vld [vmem:[%s5193_s0 + $0x20] sm:$0xff]  ;;  %v88_v15 = vld [vmem:[%s5193_s0 + $0x228] sm:$0xff] }
   0x6   :  { %3117 = vmatprep.subr.mxu0 %v148_v2  ;;  %3315 = vmatprep.subr.mxu1 %v148_v2  ;;  %v87_v13 = vld [vmem:[%s5193_s0 + $0x220] sm:$0xff]  ;;  %v25_v16 = vld [vmem:[%s5193_s0 + $0x30] sm:$0xff]  ;;  %v26_v18 = vld [vmem:[%s5193_s0 + $0x38] sm:$0xff] }
   0x7   :  { %3118 = vmatpush3.msra.mxu0 %v148_v2  ;;  %3319 = vmatpush3.msra.mxu1 %v148_v2  ;;  %v89_v17 = vld [vmem:[%s5193_s0 + $0x230] sm:$0xff]  ;;  %v90_v19 = vld [vmem:[%s5193_s0 + $0x238] sm:$0xff]  ;;  %v27_v20 = vld [vmem:[%s5193_s0 + $0x40] sm:$0xff] }
   0x8   :  { %3119 = vmatprep.subr.mxu0 %v147_v3  ;;  %3316 = vmatprep.subr.mxu1 %v147_v3  ;;  %v91_v21 = vld [vmem:[%s5193_s0 + $0x240] sm:$0xff]  ;;  %v28_v22 = vld [vmem:[%s5193_s0 + $0x48] sm:$0xff]  ;;  %v29_v24 = vld [vmem:[%s5193_s0 + $0x50] sm:$0xff] }
   0x9   :  { %3120 = vmatpush3.msra.mxu0 %v147_v3  ;;  %3320 = vmatpush3.msra.mxu1 %v147_v3  ;;  %v92_v23 = vld [vmem:[%s5193_s0 + $0x248] sm:$0xff]  ;;  %v93_v25 = vld [vmem:[%s5193_s0 + $0x250] sm:$0xff]  ;;  %v30_v26 = vld [vmem:[%s5193_s0 + $0x58] sm:$0xff] }
   0xa   :  { %3121 = vmatprep.mubr.msk.f32.mxu0 %vm156_vm0, %v19_v4  ;;  %3217 = vmatprep.mubr.msk.f32.mxu1 %vm156_vm0, %v83_v5  ;;  %v94_v27 = vld [vmem:[%s5193_s0 + $0x258] sm:$0xff]  ;;  %v31_v28 = vld [vmem:[%s5193_s0 + $0x60] sm:$0xff]  ;;  %v32_v30 = vld [vmem:[%s5193_s0 + $0x68] sm:$0xff] }
   0xb   :  { %3122 = vmatmul.mubr.msk.f32.vlgmr.msra.gmra.mxu0 %vm156_vm0, %v20_v6  ;;  %3218 = vmatmul.mubr.msk.f32.vlgmr.msra.gmra.mxu1 %vm156_vm0, %v84_v7  ;;  %v95_v29 = vld [vmem:[%s5193_s0 + $0x260] sm:$0xff]  ;;  %v96_v31 = vld [vmem:[%s5193_s0 + $0x268] sm:$0xff]  ;;  %v33_v32 = vld [vmem:[%s5193_s0 + $0x70] sm:$0xff] }
   0xc   :  { %3124 = vmatprep.mubr.msk.f32.mxu0 %vm156_vm0, %v21_v8  ;;  %3220 = vmatprep.mubr.msk.f32.mxu1 %vm156_vm0, %v85_v9  ;;  %v97_v33 = vld [vmem:[%s5193_s0 + $0x270] sm:$0xff]  ;;  %v34_v34 = vld [vmem:[%s5193_s0 + $0x78] sm:$0xff] }
   0xd   :  { %v98_v35 = vld [vmem:[%s5193_s0 + $0x278] sm:$0xff] }
   0xf   :  { %3125 = vmatmul.mubr.msk.f32.gmra.mxu0 %vm156_vm0, %v22_v10  ;;  %3221 = vmatmul.mubr.msk.f32.gmra.mxu1 %vm156_vm0, %v86_v11 }
  0x10   :  { %3127 = vmatprep.mubr.msk.f32.mxu0 %vm156_vm0, %v23_v12  ;;  %3223 = vmatprep.mubr.msk.f32.mxu1 %vm156_vm0, %v87_v13 }
  0x13   :  { %3128 = vmatmul.mubr.msk.f32.gmra.mxu0 %vm156_vm0, %v24_v14  ;;  %3224 = vmatmul.mubr.msk.f32.gmra.mxu1 %vm156_vm0, %v88_v15 }
  0x14   :  { %3130 = vmatprep.mubr.msk.f32.mxu0 %vm156_vm0, %v25_v16  ;;  %3226 = vmatprep.mubr.msk.f32.mxu1 %vm156_vm0, %v89_v17 }
  0x17   :  { %3131 = vmatmul.mubr.msk.f32.gmra.mxu0 %vm156_vm0, %v26_v18  ;;  %3227 = vmatmul.mubr.msk.f32.gmra.mxu1 %vm156_vm0, %v90_v19 }
  0x18   :  { %3133 = vmatprep.mubr.msk.f32.mxu0 %vm156_vm0, %v27_v20  ;;  %3229 = vmatprep.mubr.msk.f32.mxu1 %vm156_vm0, %v91_v21 }
  0x1b   :  { %3134 = vmatmul.mubr.msk.f32.gmra.mxu0 %vm156_vm0, %v28_v22  ;;  %3230 = vmatmul.mubr.msk.f32.gmra.mxu1 %vm156_vm0, %v92_v23 }
  0x1c   :  { %3136 = vmatprep.mubr.msk.f32.mxu0 %vm156_vm0, %v29_v24  ;;  %3232 = vmatprep.mubr.msk.f32.mxu1 %vm156_vm0, %v93_v25 }
  0x1f   :  { %3137 = vmatmul.mubr.msk.f32.gmra.mxu0 %vm156_vm0, %v30_v26  ;;  %3233 = vmatmul.mubr.msk.f32.gmra.mxu1 %vm156_vm0, %v94_v27 }
  0x20   :  { %3139 = vmatprep.mubr.msk.f32.mxu0 %vm156_vm0, %v31_v28  ;;  %3235 = vmatprep.mubr.msk.f32.mxu1 %vm156_vm0, %v95_v29 }
  0x23   :  { %3140 = vmatmul.mubr.msk.f32.gmra.mxu0 %vm156_vm0, %v32_v30  ;;  %3236 = vmatmul.mubr.msk.f32.gmra.mxu1 %vm156_vm0, %v96_v31 }
  0x24   :  { %3142 = vmatprep.mubr.msk.f32.mxu0 %vm156_vm0, %v33_v32  ;;  %3238 = vmatprep.mubr.msk.f32.mxu1 %vm156_vm0, %v97_v33 }
  0x25   :  { %10 = vsyncpa [#allocation4], 0  ;;  %v35_v36 = vld [vmem:[%s5193_s0 + $0x80] sm:$0xff]  ;;  %v36_v38 = vld [vmem:[%s5193_s0 + $0x88] sm:$0xff]  ;;  %vm1507_vm1 = vcmask 130048   ;;  %vm2049_vm2 = vcmask 130112  }
  0x26   :  { %v99_v37 = vld [vmem:[%s5193_s0 + $0x280] sm:$0xff]  ;;  %v100_v39 = vld [vmem:[%s5193_s0 + $0x288] sm:$0xff]  ;;  %v37_v40 = vld [vmem:[%s5193_s0 + $0x90] sm:$0xff]  ;;  %vm2056_vm3 = vcmask 195712   ;;  %vm2063_vm4 = vcmask 261312   ;;  %vm2070_vm5 = vcmask 326912  }
  0x27   :  { %3143 = vmatmul.mubr.msk.f32.gmra.mxu0 %vm156_vm0, %v34_v34  ;;  %3239 = vmatmul.mubr.msk.f32.gmra.mxu1 %vm156_vm0, %v98_v35  ;;  %v101_v41 = vld [vmem:[%s5193_s0 + $0x290] sm:$0xff]  ;;  %v38_v42 = vld [vmem:[%s5193_s0 + $0x98] sm:$0xff]  ;;  %v39_v44 = vld [vmem:[%s5193_s0 + $0xa0] sm:$0xff]  ;;  %vm2077_vm6 = vcmask 392512   ;;  %vm2084_vm7 = vcmask 458112   ;;  %vm2091_vm8 = vcmask 523712  }
  0x28   :  { %3145 = vmatprep.mubr.msk.f32.mxu0 %vm156_vm0, %v35_v36  ;;  %3241 = vmatprep.mubr.msk.f32.mxu1 %vm156_vm0, %v99_v37  ;;  %v102_v43 = vld [vmem:[%s5193_s0 + $0x298] sm:$0xff]  ;;  %v103_v45 = vld [vmem:[%s5193_s0 + $0x2a0] sm:$0xff]  ;;  %v40_v46 = vld [vmem:[%s5193_s0 + $0xa8] sm:$0xff]  ;;  %vm2098_vm9 = vcmask 589312   ;;  %vm2105_vm10 = vcmask 654912   ;;  %vm2112_vm11 = vcmask 720512  }
  0x29   :  { %v104_v47 = vld [vmem:[%s5193_s0 + $0x2a8] sm:$0xff]  ;;  %v41_v48 = vld [vmem:[%s5193_s0 + $0xb0] sm:$0xff]  ;;  %v42_v50 = vld [vmem:[%s5193_s0 + $0xb8] sm:$0xff]  ;;  %vm2119_vm12 = vcmask 786112   ;;  %vm2126_vm13 = vcmask 851712   ;;  %vm2133_vm14 = vcmask 917312  }
  0x2a   :  { %v105_v49 = vld [vmem:[%s5193_s0 + $0x2b0] sm:$0xff]  ;;  %v106_v51 = vld [vmem:[%s5193_s0 + $0x2b8] sm:$0xff]  ;;  %v43_v52 = vld [vmem:[%s5193_s0 + $0xc0] sm:$0xff]  ;;  %vm2140_vm15 = vcmask 982912  }
  0x2b   :  { %3146 = vmatmul.mubr.msk.f32.gmra.mxu0 %vm156_vm0, %v36_v38  ;;  %3242 = vmatmul.mubr.msk.f32.gmra.mxu1 %vm156_vm0, %v100_v39  ;;  %v107_v53 = vld [vmem:[%s5193_s0 + $0x2c0] sm:$0xff]  ;;  %v44_v54 = vld [vmem:[%s5193_s0 + $0xc8] sm:$0xff]  ;;  %v45_v56 = vld [vmem:[%s5193_s0 + $0xd0] sm:$0xff] }
  0x2c   :  { %3148 = vmatprep.mubr.msk.f32.mxu0 %vm156_vm0, %v37_v40  ;;  %3244 = vmatprep.mubr.msk.f32.mxu1 %vm156_vm0, %v101_v41  ;;  %v108_v55 = vld [vmem:[%s5193_s0 + $0x2c8] sm:$0xff]  ;;  %v109_v57 = vld [vmem:[%s5193_s0 + $0x2d0] sm:$0xff]  ;;  %v46_v58 = vld [vmem:[%s5193_s0 + $0xd8] sm:$0xff] }
  0x2d   :  { %v110_v59 = vld [vmem:[%s5193_s0 + $0x2d8] sm:$0xff]  ;;  %v47_v60 = vld [vmem:[%s5193_s0 + $0xe0] sm:$0xff]  ;;  %v48_v62 = vld [vmem:[%s5193_s0 + $0xe8] sm:$0xff] }
  0x2e   :  { %v111_v61 = vld [vmem:[%s5193_s0 + $0x2e0] sm:$0xff]  ;;  %v112_v63 = vld [vmem:[%s5193_s0 + $0x2e8] sm:$0xff]  ;;  %v49_v0 = vld [vmem:[%s5193_s0 + $0xf0] sm:$0xff] }
  0x2f   :  { %3149 = vmatmul.mubr.msk.f32.gmra.mxu0 %vm156_vm0, %v38_v42  ;;  %3245 = vmatmul.mubr.msk.f32.gmra.mxu1 %vm156_vm0, %v102_v43  ;;  %v113_v1 = vld [vmem:[%s5193_s0 + $0x2f0] sm:$0xff]  ;;  %v50_v2 = vld [vmem:[%s5193_s0 + $0xf8] sm:$0xff]  ;;  %v51_v4 = vld [vmem:[%s5193_s0 + $0x100] sm:$0xff] }
  0x30   :  { %3151 = vmatprep.mubr.msk.f32.mxu0 %vm156_vm0, %v39_v44  ;;  %3247 = vmatprep.mubr.msk.f32.mxu1 %vm156_vm0, %v103_v45  ;;  %v114_v3 = vld [vmem:[%s5193_s0 + $0x2f8] sm:$0xff]  ;;  %v115_v5 = vld [vmem:[%s5193_s0 + $0x300] sm:$0xff]  ;;  %v52_v6 = vld [vmem:[%s5193_s0 + $0x108] sm:$0xff] }
  0x31   :  { %v116_v7 = vld [vmem:[%s5193_s0 + $0x308] sm:$0xff]  ;;  %v53_v8 = vld [vmem:[%s5193_s0 + $0x110] sm:$0xff]  ;;  %v54_v10 = vld [vmem:[%s5193_s0 + $0x118] sm:$0xff] }
  0x32   :  { %v117_v9 = vld [vmem:[%s5193_s0 + $0x310] sm:$0xff]  ;;  %v118_v11 = vld [vmem:[%s5193_s0 + $0x318] sm:$0xff]  ;;  %v55_v12 = vld [vmem:[%s5193_s0 + $0x120] sm:$0xff] }
  0x33   :  { %3152 = vmatmul.mubr.msk.f32.gmra.mxu0 %vm156_vm0, %v40_v46  ;;  %3248 = vmatmul.mubr.msk.f32.gmra.mxu1 %vm156_vm0, %v104_v47  ;;  %v119_v13 = vld [vmem:[%s5193_s0 + $0x320] sm:$0xff]  ;;  %v56_v14 = vld [vmem:[%s5193_s0 + $0x128] sm:$0xff]  ;;  %v57_v16 = vld [vmem:[%s5193_s0 + $0x130] sm:$0xff] }
  0x34   :  { %3154 = vmatprep.mubr.msk.f32.mxu0 %vm156_vm0, %v41_v48  ;;  %3250 = vmatprep.mubr.msk.f32.mxu1 %vm156_vm0, %v105_v49  ;;  %v120_v15 = vld [vmem:[%s5193_s0 + $0x328] sm:$0xff]  ;;  %v121_v17 = vld [vmem:[%s5193_s0 + $0x330] sm:$0xff]  ;;  %v58_v18 = vld [vmem:[%s5193_s0 + $0x138] sm:$0xff] }
  0x35   :  { %v122_v19 = vld [vmem:[%s5193_s0 + $0x338] sm:$0xff]  ;;  %v59_v20 = vld [vmem:[%s5193_s0 + $0x140] sm:$0xff]  ;;  %v60_v22 = vld [vmem:[%s5193_s0 + $0x148] sm:$0xff] }
  0x36   :  { %v123_v21 = vld [vmem:[%s5193_s0 + $0x340] sm:$0xff]  ;;  %v124_v23 = vld [vmem:[%s5193_s0 + $0x348] sm:$0xff]  ;;  %v61_v24 = vld [vmem:[%s5193_s0 + $0x150] sm:$0xff] }
  0x37   :  { %3155 = vmatmul.mubr.msk.f32.gmra.mxu0 %vm156_vm0, %v42_v50  ;;  %3251 = vmatmul.mubr.msk.f32.gmra.mxu1 %vm156_vm0, %v106_v51  ;;  %v125_v25 = vld [vmem:[%s5193_s0 + $0x350] sm:$0xff]  ;;  %v62_v26 = vld [vmem:[%s5193_s0 + $0x158] sm:$0xff]  ;;  %v63_v28 = vld [vmem:[%s5193_s0 + $0x160] sm:$0xff] }
  0x38   :  { %3157 = vmatprep.mubr.msk.f32.mxu0 %vm156_vm0, %v43_v52  ;;  %3253 = vmatprep.mubr.msk.f32.mxu1 %vm156_vm0, %v107_v53  ;;  %v126_v27 = vld [vmem:[%s5193_s0 + $0x358] sm:$0xff]  ;;  %v127_v29 = vld [vmem:[%s5193_s0 + $0x360] sm:$0xff]  ;;  %v64_v30 = vld [vmem:[%s5193_s0 + $0x168] sm:$0xff] }
  0x39   :  { %v128_v31 = vld [vmem:[%s5193_s0 + $0x368] sm:$0xff]  ;;  %v65_v32 = vld [vmem:[%s5193_s0 + $0x170] sm:$0xff]  ;;  %v66_v34 = vld [vmem:[%s5193_s0 + $0x178] sm:$0xff] }
  0x3a   :  { %v129_v33 = vld [vmem:[%s5193_s0 + $0x370] sm:$0xff]  ;;  %v130_v35 = vld [vmem:[%s5193_s0 + $0x378] sm:$0xff]  ;;  %v131_v36 = vld [vmem:[%s5193_s0 + $0x380] sm:$0xff] }
  0x3b   :  { %3158 = vmatmul.mubr.msk.f32.gmra.mxu0 %vm156_vm0, %v44_v54  ;;  %3254 = vmatmul.mubr.msk.f32.gmra.mxu1 %vm156_vm0, %v108_v55  ;;  %v67_v37 = vld [vmem:[%s5193_s0 + $0x180] sm:$0xff]  ;;  %v132_v38 = vld [vmem:[%s5193_s0 + $0x388] sm:$0xff]  ;;  %v69_v40 = vld [vmem:[%s5193_s0 + $0x190] sm:$0xff] }
  0x3c   :  { %3160 = vmatprep.mubr.msk.f32.mxu0 %vm156_vm0, %v45_v56  ;;  %3256 = vmatprep.mubr.msk.f32.mxu1 %vm156_vm0, %v109_v57  ;;  %v68_v39 = vld [vmem:[%s5193_s0 + $0x188] sm:$0xff]  ;;  %v133_v41 = vld [vmem:[%s5193_s0 + $0x390] sm:$0xff]  ;;  %v70_v42 = vld [vmem:[%s5193_s0 + $0x198] sm:$0xff] }
  0x3d   :  { %v134_v43 = vld [vmem:[%s5193_s0 + $0x398] sm:$0xff]  ;;  %v71_v44 = vld [vmem:[%s5193_s0 + $0x1a0] sm:$0xff]  ;;  %v72_v46 = vld [vmem:[%s5193_s0 + $0x1a8] sm:$0xff] }
  0x3e   :  { %v135_v45 = vld [vmem:[%s5193_s0 + $0x3a0] sm:$0xff]  ;;  %v136_v47 = vld [vmem:[%s5193_s0 + $0x3a8] sm:$0xff]  ;;  %v73_v48 = vld [vmem:[%s5193_s0 + $0x1b0] sm:$0xff] }
  0x3f   :  { %3161 = vmatmul.mubr.msk.f32.gmra.mxu0 %vm156_vm0, %v46_v58  ;;  %3257 = vmatmul.mubr.msk.f32.gmra.mxu1 %vm156_vm0, %v110_v59  ;;  %v137_v49 = vld [vmem:[%s5193_s0 + $0x3b0] sm:$0xff]  ;;  %v74_v50 = vld [vmem:[%s5193_s0 + $0x1b8] sm:$0xff]  ;;  %v75_v52 = vld [vmem:[%s5193_s0 + $0x1c0] sm:$0xff] }
  0x40   :  { %3163 = vmatprep.mubr.msk.f32.mxu0 %vm156_vm0, %v47_v60  ;;  %3259 = vmatprep.mubr.msk.f32.mxu1 %vm156_vm0, %v111_v61  ;;  %v138_v51 = vld [vmem:[%s5193_s0 + $0x3b8] sm:$0xff]  ;;  %v139_v53 = vld [vmem:[%s5193_s0 + $0x3c0] sm:$0xff]  ;;  %v76_v54 = vld [vmem:[%s5193_s0 + $0x1c8] sm:$0xff] }
  0x41   :  { %v140_v55 = vld [vmem:[%s5193_s0 + $0x3c8] sm:$0xff]  ;;  %v77_v56 = vld [vmem:[%s5193_s0 + $0x1d0] sm:$0xff]  ;;  %v78_v58 = vld [vmem:[%s5193_s0 + $0x1d8] sm:$0xff] }
  0x42   :  { %v141_v57 = vld [vmem:[%s5193_s0 + $0x3d0] sm:$0xff]  ;;  %v142_v59 = vld [vmem:[%s5193_s0 + $0x3d8] sm:$0xff]  ;;  %v79_v60 = vld [vmem:[%s5193_s0 + $0x1e0] sm:$0xff] }
  0x43   :  { %3164 = vmatmul.mubr.msk.f32.gmra.mxu0 %vm156_vm0, %v48_v62  ;;  %3260 = vmatmul.mubr.msk.f32.gmra.mxu1 %vm156_vm0, %v112_v63  ;;  %v143_v61 = vld [vmem:[%s5193_s0 + $0x3e0] sm:$0xff]  ;;  %v80_v62 = vld [vmem:[%s5193_s0 + $0x1e8] sm:$0xff] }
  0x44   :  { %3166 = vmatprep.mubr.msk.f32.mxu0 %vm156_vm0, %v49_v0  ;;  %3262 = vmatprep.mubr.msk.f32.mxu1 %vm156_vm0, %v113_v1  ;;  %v144_v63 = vld [vmem:[%s5193_s0 + $0x3e8] sm:$0xff]  ;;  %v81_v0 = vld [vmem:[%s5193_s0 + $0x1f0] sm:$0xff] }
  0x45   :  { %v145_v1 = vld [vmem:[%s5193_s0 + $0x3f0] sm:$0xff] }
  0x47   :  { %3167 = vmatmul.mubr.msk.f32.gmra.mxu0 %vm156_vm0, %v50_v2  ;;  %3263 = vmatmul.mubr.msk.f32.gmra.mxu1 %vm156_vm0, %v114_v3  ;;  %v82_v2 = vld [vmem:[%s5193_s0 + $0x1f8] sm:$0xff] }
  0x48   :  { %3169 = vmatprep.mubr.msk.f32.mxu0 %vm156_vm0, %v51_v4  ;;  %3265 = vmatprep.mubr.msk.f32.mxu1 %vm156_vm0, %v115_v5  ;;  %v146_v3 = vld [vmem:[%s5193_s0 + $0x3f8] sm:$0xff]  ;;  %v4157_v4 = vld [vmem:[%s5195_s2] ss:$0 sm:$0xff] }
  0x4b   :  { %3170 = vmatmul.mubr.msk.f32.gmra.mxu0 %vm156_vm0, %v52_v6  ;;  %3266 = vmatmul.mubr.msk.f32.gmra.mxu1 %vm156_vm0, %v116_v7 }
  0x4c   :  { %3172 = vmatprep.mubr.msk.f32.mxu0 %vm156_vm0, %v53_v8  ;;  %3268 = vmatprep.mubr.msk.f32.mxu1 %vm156_vm0, %v117_v9 }
  0x4f   :  { %3173 = vmatmul.mubr.msk.f32.gmra.mxu0 %vm156_vm0, %v54_v10  ;;  %3269 = vmatmul.mubr.msk.f32.gmra.mxu1 %vm156_vm0, %v118_v11 }
  0x50   :  { %3175 = vmatprep.mubr.msk.f32.mxu0 %vm156_vm0, %v55_v12  ;;  %3271 = vmatprep.mubr.msk.f32.mxu1 %vm156_vm0, %v119_v13 }
  0x53   :  { %3176 = vmatmul.mubr.msk.f32.gmra.mxu0 %vm156_vm0, %v56_v14  ;;  %3272 = vmatmul.mubr.msk.f32.gmra.mxu1 %vm156_vm0, %v120_v15 }
  0x54   :  { %3178 = vmatprep.mubr.msk.f32.mxu0 %vm156_vm0, %v57_v16  ;;  %3274 = vmatprep.mubr.msk.f32.mxu1 %vm156_vm0, %v121_v17 }
  0x57   :  { %3179 = vmatmul.mubr.msk.f32.gmra.mxu0 %vm156_vm0, %v58_v18  ;;  %3275 = vmatmul.mubr.msk.f32.gmra.mxu1 %vm156_vm0, %v122_v19 }
  0x58   :  { %3181 = vmatprep.mubr.msk.f32.mxu0 %vm156_vm0, %v59_v20  ;;  %3277 = vmatprep.mubr.msk.f32.mxu1 %vm156_vm0, %v123_v21 }
  0x5b   :  { %3182 = vmatmul.mubr.msk.f32.gmra.mxu0 %vm156_vm0, %v60_v22  ;;  %3278 = vmatmul.mubr.msk.f32.gmra.mxu1 %vm156_vm0, %v124_v23 }
  0x5c   :  { %3184 = vmatprep.mubr.msk.f32.mxu0 %vm156_vm0, %v61_v24  ;;  %3280 = vmatprep.mubr.msk.f32.mxu1 %vm156_vm0, %v125_v25 }
  0x5f   :  { %3185 = vmatmul.mubr.msk.f32.gmra.mxu0 %vm156_vm0, %v62_v26  ;;  %3281 = vmatmul.mubr.msk.f32.gmra.mxu1 %vm156_vm0, %v126_v27 }
  0x60   :  { %3187 = vmatprep.mubr.msk.f32.mxu0 %vm156_vm0, %v63_v28  ;;  %3283 = vmatprep.mubr.msk.f32.mxu1 %vm156_vm0, %v127_v29  ;;  %v4172_v28 = vld [vmem:[%s5195_s2 + $0x1] ss:$0 sm:$0xff] }
  0x63   :  { %3188 = vmatmul.mubr.msk.f32.gmra.mxu0 %vm156_vm0, %v64_v30  ;;  %3284 = vmatmul.mubr.msk.f32.gmra.mxu1 %vm156_vm0, %v128_v31 }
  0x64   :  { %3190 = vmatprep.mubr.msk.f32.mxu0 %vm156_vm0, %v65_v32  ;;  %3286 = vmatprep.mubr.msk.f32.mxu1 %vm156_vm0, %v129_v33 }
  0x67   :  { %3191 = vmatmul.mubr.msk.f32.gmra.mxu0 %vm156_vm0, %v66_v34  ;;  %3287 = vmatmul.mubr.msk.f32.gmra.mxu1 %vm156_vm0, %v130_v35 }
  0x68   :  { %3289 = vmatprep.mubr.msk.f32.mxu1 %vm156_vm0, %v131_v36  ;;  %3193 = vmatprep.mubr.msk.f32.mxu0 %vm156_vm0, %v67_v37 }
  0x6b   :  { %3290 = vmatmul.mubr.msk.f32.gmra.mxu1 %vm156_vm0, %v132_v38  ;;  %3194 = vmatmul.mubr.msk.f32.gmra.mxu0 %vm156_vm0, %v68_v39 }
  0x6c   :  { %3196 = vmatprep.mubr.msk.f32.mxu0 %vm156_vm0, %v69_v40  ;;  %3292 = vmatprep.mubr.msk.f32.mxu1 %vm156_vm0, %v133_v41 }
  0x6f   :  { %3197 = vmatmul.mubr.msk.f32.gmra.mxu0 %vm156_vm0, %v70_v42  ;;  %3293 = vmatmul.mubr.msk.f32.gmra.mxu1 %vm156_vm0, %v134_v43 }
  0x70   :  { %3199 = vmatprep.mubr.msk.f32.mxu0 %vm156_vm0, %v71_v44  ;;  %3295 = vmatprep.mubr.msk.f32.mxu1 %vm156_vm0, %v135_v45 }
  0x73   :  { %3200 = vmatmul.mubr.msk.f32.gmra.mxu0 %vm156_vm0, %v72_v46  ;;  %3296 = vmatmul.mubr.msk.f32.gmra.mxu1 %vm156_vm0, %v136_v47 }
  0x74   :  { %3202 = vmatprep.mubr.msk.f32.mxu0 %vm156_vm0, %v73_v48  ;;  %3298 = vmatprep.mubr.msk.f32.mxu1 %vm156_vm0, %v137_v49 }
  0x77   :  { %3203 = vmatmul.mubr.msk.f32.gmra.mxu0 %vm156_vm0, %v74_v50  ;;  %3299 = vmatmul.mubr.msk.f32.gmra.mxu1 %vm156_vm0, %v138_v51 }
  0x78   :  { %3205 = vmatprep.mubr.msk.f32.mxu0 %vm156_vm0, %v75_v52  ;;  %3301 = vmatprep.mubr.msk.f32.mxu1 %vm156_vm0, %v139_v53 }
  0x7b   :  { %3206 = vmatmul.mubr.msk.f32.gmra.mxu0 %vm156_vm0, %v76_v54  ;;  %3302 = vmatmul.mubr.msk.f32.gmra.mxu1 %vm156_vm0, %v140_v55 }
  0x7c   :  { %3208 = vmatprep.mubr.msk.f32.mxu0 %vm156_vm0, %v77_v56  ;;  %3304 = vmatprep.mubr.msk.f32.mxu1 %vm156_vm0, %v141_v57 }
  0x7f   :  { %3209 = vmatmul.mubr.msk.f32.gmra.mxu0 %vm156_vm0, %v78_v58  ;;  %3305 = vmatmul.mubr.msk.f32.gmra.mxu1 %vm156_vm0, %v142_v59 }
  0x80   :  { %3211 = vmatprep.mubr.msk.f32.mxu0 %vm156_vm0, %v79_v60  ;;  %3307 = vmatprep.mubr.msk.f32.mxu1 %vm156_vm0, %v143_v61 }
  0x83   :  { %3212 = vmatmul.mubr.msk.f32.gmra.mxu0 %vm156_vm0, %v80_v62  ;;  %3308 = vmatmul.mubr.msk.f32.gmra.mxu1 %vm156_vm0, %v144_v63 }
  0x84   :  { %3214 = vmatprep.mubr.msk.f32.mxu0 %vm156_vm0, %v81_v0  ;;  %3310 = vmatprep.mubr.msk.f32.mxu1 %vm156_vm0, %v145_v1 }
  0x87   :  { %3215 = vmatmul.mubr.msk.f32.gmra.mxu0 %vm156_vm0, %v82_v2  ;;  %3311 = vmatmul.mubr.msk.f32.gmra.mxu1 %vm156_vm0, %v146_v3  ;;  %vm2147_vm0 = vcmask 1048512  }
  0xcb   :  { %v3123_v5 = vpop.f32.mrf.mxu0  ;;  %v3219_v6 = vpop.f32.mrf.mxu1 }
  0xcc   :  { %v613_v7 = vadd.f32 %v3123_v5, %v4157_v4  ;;  %v933_v8 = vadd.f32 %v3219_v6, %v4157_v4 }
  0xcd   :  { %v607_v9 = vpop.f32.mrf.mxu0  ;;  %v927_v10 = vpop.f32.mrf.mxu1 }
  0xce   :  { %3322 = vtanh.f32 %v613_v7  ;;  %v608_v11 = vadd.f32 %v4157_v4, %v607_v9  ;;  %v928_v12 = vadd.f32 %v4157_v4, %v927_v10 }
  0xcf   :  { %3324 = vtanh.f32 %v933_v8  ;;  %v3126_v13 = vpop.f32.mrf.mxu0  ;;  %v3222_v14 = vpop.f32.mrf.mxu1 }
  0xd0   :  { %3326 = vtanh.f32 %v608_v11  ;;  %v623_v15 = vadd.f32 %v3126_v13, %v4157_v4  ;;  %v943_v16 = vadd.f32 %v3222_v14, %v4157_v4 }
  0xd1   :  { %3328 = vtanh.f32 %v928_v12  ;;  %v617_v17 = vpop.f32.mrf.mxu0  ;;  %v937_v18 = vpop.f32.mrf.mxu1 }
  0xd2   :  { %3330 = vtanh.f32 %v623_v15  ;;  %v938_v19 = vadd.f32 %v4157_v4, %v937_v18  ;;  %v618_v20 = vadd.f32 %v4157_v4, %v617_v17 }
  0xd3   :  { %3332 = vtanh.f32 %v943_v16  ;;  %v3129_v21 = vpop.f32.mrf.mxu0  ;;  %v3225_v22 = vpop.f32.mrf.mxu1 }
  0xd4   :  { %3334 = vtanh.f32 %v938_v19  ;;  %v633_v25 = vadd.f32 %v3129_v21, %v4157_v4  ;;  %v953_v32 = vadd.f32 %v3225_v22, %v4157_v4 }
  0xd5   :  { %v627_v23 = vpop.f32.mrf.mxu0  ;;  %3336 = vtanh.f32 %v618_v20  ;;  %v947_v26 = vpop.f32.mrf.mxu1 }
  0xd6   :  { %v628_v24 = vadd.f32 %v4157_v4, %v627_v23  ;;  %v948_v29 = vadd.f32 %v4157_v4, %v947_v26 }
  0xd7   :  { %v3132_v27 = vpop.f32.mrf.mxu0  ;;  %v3228_v30 = vpop.f32.mrf.mxu1 }
  0xd8   :  { %3338 = vtanh.f32 %v628_v24  ;;  %v643_v45 = vadd.f32 %v3132_v27, %v4157_v4  ;;  %v963_v55 = vadd.f32 %v3228_v30, %v4157_v4 }
  0xd9   :  { %3340 = vtanh.f32 %v633_v25  ;;  %v637_v33 = vpop.f32.mrf.mxu0  ;;  %v957_v42 = vpop.f32.mrf.mxu1 }
  0xda   :  { %3342 = vtanh.f32 %v948_v29  ;;  %v638_v40 = vadd.f32 %v4157_v4, %v637_v33  ;;  %v958_v49 = vadd.f32 %v4157_v4, %v957_v42 }
  0xdb   :  { %v3323_v31 = vpop.eup %3322  ;;  %3344 = vtanh.f32 %v953_v32  ;;  %v3135_v46 = vpop.f32.mrf.mxu0 }
  0xdc   :  { %v3325_v34 = vpop.eup %3324  ;;  %v1380_v35 = vmul.f32 %v3323_v31, %v4172_v28  ;;  %3346 = vtanh.f32 %v638_v40  ;;  %v3231_v57 = vpop.f32.mrf.mxu1  ;;  %v653_v0 = vadd.f32 %v3135_v46, %v4157_v4 }
  0xdd   :  { %v3327_v36 = vpop.eup %3326  ;;  %v1444_v37 = vmul.f32 %v3325_v34, %v4172_v28  ;;  %3348 = vtanh.f32 %v643_v45  ;;  %v647_v56 = vpop.f32.mrf.mxu0  ;;  %v973_v10 = vadd.f32 %v3231_v57, %v4157_v4 }
  0xde   :  { %v3329_v38 = vpop.eup %3328  ;;  %v1511_v39 = vsel %vm1507_vm1, %v1380_v35, 0.0  ;;  %v1379_v41 = vmul.f32 %v3327_v36, %v4172_v28  ;;  %3350 = vtanh.f32 %v958_v49  ;;  %v648_v61 = vadd.f32 %v4157_v4, %v647_v56  ;;  %v967_v2 = vpop.f32.mrf.mxu1 }
  0xdf   :  { %v3331_v43 = vpop.eup %3330  ;;  %v1703_v44 = vsel %vm1507_vm1, %v1444_v37, 0.0  ;;  %1512 = vadd.xlane.f32.xlu0 %v1511_v39  ;;  %v1443_v53 = vmul.f32 %v3329_v38, %v4172_v28  ;;  %3352 = vtanh.f32 %v963_v55  ;;  %v3138_v3 = vpop.f32.mrf.mxu0  ;;  %v968_v7 = vadd.f32 %v4157_v4, %v967_v2 }
  0xe0   :  { %v3333_v47 = vpop.eup %3332  ;;  %1704 = vadd.xlane.f32.xlu1 %v1703_v44  ;;  %v1382_v48 = vmul.f32 %v3331_v43, %v4172_v28  ;;  %v1508_v52 = vsel %vm1507_vm1, %v1379_v41, 0.0  ;;  %3354 = vtanh.f32 %v648_v61  ;;  %v3234_v14 = vpop.f32.mrf.mxu1  ;;  %v663_v20 = vadd.f32 %v3138_v3, %v4157_v4 }
  0xe1   :  { %v1446_v50 = vmul.f32 %v3333_v47, %v4172_v28  ;;  %v3335_v54 = vpop.eup %3334  ;;  %v1700_v60 = vsel %vm1507_vm1, %v1443_v53, 0.0  ;;  %3356 = vtanh.f32 %v653_v0  ;;  %v657_v13 = vpop.f32.mrf.mxu0  ;;  %v983_v31 = vadd.f32 %v3234_v14, %v4157_v4 }
  0xe2   :  { %v1517_v51 = vsel %vm1507_vm1, %v1382_v48, 0.0  ;;  %v3337_v58 = vpop.eup %3336  ;;  %v1445_v62 = vmul.f32 %v3335_v54, %v4172_v28  ;;  %3358 = vtanh.f32 %v968_v7  ;;  %v658_v17 = vadd.f32 %v4157_v4, %v657_v13  ;;  %v977_v23 = vpop.f32.mrf.mxu1 }
  0xe3   :  { %1509 = vadd.xlane.f32.xlu0 %v1508_v52  ;;  %v1709_v59 = vsel %vm1507_vm1, %v1446_v50, 0.0  ;;  %v1381_v1 = vmul.f32 %v3337_v58, %v4172_v28  ;;  %3360 = vtanh.f32 %v973_v10  ;;  %v3141_v24 = vpop.f32.mrf.mxu0  ;;  %v978_v27 = vadd.f32 %v4157_v4, %v977_v23 }
  0xe4   :  { %1518 = vadd.xlane.f32.xlu1 %v1517_v51  ;;  %v1706_v6 = vsel %vm1507_vm1, %v1445_v62, 0.0  ;;  %3362 = vtanh.f32 %v658_v17  ;;  %v3237_v35 = vpop.f32.mrf.mxu1  ;;  %v673_v41 = vadd.f32 %v3141_v24, %v4157_v4 }
  0xe5   :  { %v3339_v63 = vpop.eup %3338  ;;  %v1514_v11 = vsel %vm1507_vm1, %v1381_v1, 0.0  ;;  %3364 = vtanh.f32 %v663_v20  ;;  %v667_v34 = vpop.f32.mrf.mxu0  ;;  %v993_v51 = vadd.f32 %v3237_v35, %v4157_v4 }
  0xe6   :  { %v3341_v5 = vpop.eup %3340  ;;  %v1383_v8 = vmul.f32 %v3339_v63, %v4172_v28  ;;  %3366 = vtanh.f32 %v978_v27  ;;  %v668_v38 = vadd.f32 %v4157_v4, %v667_v34  ;;  %v987_v44 = vpop.f32.mrf.mxu1 }
  0xe7   :  { %1701 = vadd.xlane.f32.xlu0 %v1700_v60  ;;  %v3343_v9 = vpop.eup %3342  ;;  %v1384_v12 = vmul.f32 %v3341_v5, %v4172_v28  ;;  %3368 = vtanh.f32 %v983_v31  ;;  %v3144_v45 = vpop.f32.mrf.mxu0  ;;  %v988_v48 = vadd.f32 %v4157_v4, %v987_v44 }
  0xe8   :  { %1710 = vadd.xlane.f32.xlu1 %v1709_v59  ;;  %v3345_v15 = vpop.eup %3344  ;;  %v1520_v16 = vsel %vm1507_vm1, %v1383_v8, 0.0  ;;  %v1447_v18 = vmul.f32 %v3343_v9, %v4172_v28  ;;  %3370 = vtanh.f32 %v668_v38  ;;  %v3240_v55 = vpop.f32.mrf.mxu1  ;;  %v683_v61 = vadd.f32 %v3144_v45, %v4157_v4 }
  0xe9   :  { %v3347_v19 = vpop.eup %3346  ;;  %v1523_v21 = vsel %vm1507_vm1, %v1384_v12, 0.0  ;;  %v1448_v22 = vmul.f32 %v3345_v15, %v4172_v28  ;;  %3372 = vtanh.f32 %v673_v41  ;;  %v677_v54 = vpop.f32.mrf.mxu0  ;;  %v1003_v8 = vadd.f32 %v3240_v55, %v4157_v4 }
  0xea   :  { %v3349_v25 = vpop.eup %3348  ;;  %v1712_v26 = vsel %vm1507_vm1, %v1447_v18, 0.0  ;;  %v1385_v29 = vmul.f32 %v3347_v19, %v4172_v28  ;;  %3374 = vtanh.f32 %v988_v48  ;;  %v678_v58 = vadd.f32 %v4157_v4, %v677_v54  ;;  %v997_v0 = vpop.f32.mrf.mxu1 }
  0xeb   :  { %1707 = vadd.xlane.f32.xlu0 %v1706_v6  ;;  %v3351_v30 = vpop.eup %3350  ;;  %v1715_v32 = vsel %vm1507_vm1, %v1448_v22, 0.0  ;;  %v1386_v33 = vmul.f32 %v3349_v25, %v4172_v28  ;;  %3376 = vtanh.f32 %v993_v51  ;;  %v3147_v1 = vpop.f32.mrf.mxu0  ;;  %v998_v5 = vadd.f32 %v4157_v4, %v997_v0 }
  0xec   :  { %1515 = vadd.xlane.f32.xlu1 %v1514_v11  ;;  %v3353_v36 = vpop.eup %3352  ;;  %v1526_v37 = vsel %vm1507_vm1, %v1385_v29, 0.0  ;;  %v1449_v39 = vmul.f32 %v3351_v30, %v4172_v28  ;;  %3378 = vtanh.f32 %v678_v58  ;;  %v3243_v12 = vpop.f32.mrf.mxu1  ;;  %v693_v18 = vadd.f32 %v3147_v1, %v4157_v4 }
  0xed   :  { %v3355_v40 = vpop.eup %3354  ;;  %v1529_v42 = vsel %vm1507_vm1, %v1386_v33, 0.0  ;;  %v1450_v43 = vmul.f32 %v3353_v36, %v4172_v28  ;;  %3380 = vtanh.f32 %v683_v61  ;;  %v687_v11 = vpop.f32.mrf.mxu0  ;;  %v1013_v29 = vadd.f32 %v3243_v12, %v4157_v4 }
  0xee   :  { %v3357_v46 = vpop.eup %3356  ;;  %v1718_v47 = vsel %vm1507_vm1, %v1449_v39, 0.0  ;;  %v1387_v49 = vmul.f32 %v3355_v40, %v4172_v28  ;;  %3382 = vtanh.f32 %v998_v5  ;;  %v688_v15 = vadd.f32 %v4157_v4, %v687_v11 }
  0xef   :  { %1521 = vadd.xlane.f32.xlu0 %v1520_v16  ;;  %v3359_v50 = vpop.eup %3358  ;;  %v1721_v52 = vsel %vm1507_vm1, %v1450_v43, 0.0  ;;  %v1388_v53 = vmul.f32 %v3357_v46, %v4172_v28  ;;  %3384 = vtanh.f32 %v1003_v8  ;;  %v3150_v22 = vpop.f32.mrf.mxu0 }
  0xf0   :  { %1524 = vadd.xlane.f32.xlu1 %v1523_v21  ;;  %v3361_v56 = vpop.eup %3360  ;;  %v1532_v57 = vsel %vm1507_vm1, %v1387_v49, 0.0  ;;  %v1451_v59 = vmul.f32 %v3359_v50, %v4172_v28  ;;  %v1007_v21 = vpop.f32.mrf.mxu1  ;;  %3386 = vtanh.f32 %v688_v15  ;;  %v703_v39 = vadd.f32 %v3150_v22, %v4157_v4 }
  0xf1   :  { %v3363_v60 = vpop.eup %3362  ;;  %v1535_v62 = vsel %vm1507_vm1, %v1388_v53, 0.0  ;;  %v1452_v63 = vmul.f32 %v3361_v56, %v4172_v28  ;;  %v1008_v25 = vadd.f32 %v4157_v4, %v1007_v21  ;;  %3388 = vtanh.f32 %v693_v18 }
  0xf2   :  { %v3365_v2 = vpop.eup %3364  ;;  %v1724_v3 = vsel %vm1507_vm1, %v1451_v59, 0.0  ;;  %v1389_v6 = vmul.f32 %v3363_v60, %v4172_v28  ;;  %v3246_v33 = vpop.f32.mrf.mxu1 }
  0xf3   :  { %1713 = vadd.xlane.f32.xlu0 %v1712_v26  ;;  %v3367_v7 = vpop.eup %3366  ;;  %v1727_v9 = vsel %vm1507_vm1, %v1452_v63, 0.0  ;;  %v1390_v10 = vmul.f32 %v3365_v2, %v4172_v28  ;;  %3390 = vtanh.f32 %v1008_v25  ;;  %v1023_v49 = vadd.f32 %v3246_v33, %v4157_v4 }
  0xf4   :  { %1716 = vadd.xlane.f32.xlu1 %v1715_v32  ;;  %v3369_v13 = vpop.eup %3368  ;;  %v1538_v14 = vsel %vm1507_vm1, %v1389_v6, 0.0  ;;  %v1453_v16 = vmul.f32 %v3367_v7, %v4172_v28  ;;  %v697_v32 = vpop.f32.mrf.mxu0  ;;  %3392 = vtanh.f32 %v1013_v29 }
  0xf5   :  { %v3371_v17 = vpop.eup %3370  ;;  %v1541_v19 = vsel %vm1507_vm1, %v1390_v10, 0.0  ;;  %v1454_v20 = vmul.f32 %v3369_v13, %v4172_v28  ;;  %v698_v36 = vadd.f32 %v4157_v4, %v697_v32 }
  0xf6   :  { %v3373_v23 = vpop.eup %3372  ;;  %v1730_v24 = vsel %vm1507_vm1, %v1453_v16, 0.0  ;;  %v1391_v26 = vmul.f32 %v3371_v17, %v4172_v28  ;;  %v3153_v43 = vpop.f32.mrf.mxu0 }
  0xf7   :  { %1527 = vadd.xlane.f32.xlu0 %v1526_v37  ;;  %v3375_v27 = vpop.eup %3374  ;;  %v1733_v30 = vsel %vm1507_vm1, %v1454_v20, 0.0  ;;  %v1392_v31 = vmul.f32 %v3373_v23, %v4172_v28  ;;  %3394 = vtanh.f32 %v698_v36  ;;  %v713_v59 = vadd.f32 %v3153_v43, %v4157_v4 }
  0xf8   :  { %1530 = vadd.xlane.f32.xlu1 %v1529_v42  ;;  %v3377_v34 = vpop.eup %3376  ;;  %v1544_v35 = vsel %vm1507_vm1, %v1391_v26, 0.0  ;;  %v1455_v37 = vmul.f32 %v3375_v27, %v4172_v28  ;;  %v1017_v42 = vpop.f32.mrf.mxu1  ;;  %3396 = vtanh.f32 %v703_v39 }
  0xf9   :  { %v3379_v38 = vpop.eup %3378  ;;  %v1547_v40 = vsel %vm1507_vm1, %v1392_v31, 0.0  ;;  %v1456_v41 = vmul.f32 %v3377_v34, %v4172_v28  ;;  %v1018_v46 = vadd.f32 %v4157_v4, %v1017_v42 }
  0xfa   :  { %v3381_v44 = vpop.eup %3380  ;;  %v1736_v45 = vsel %vm1507_vm1, %v1455_v37, 0.0  ;;  %v3249_v53 = vpop.f32.mrf.mxu1 }
  0xfb   :  { %1719 = vadd.xlane.f32.xlu0 %v1718_v47  ;;  %v1393_v47 = vmul.f32 %v3379_v38, %v4172_v28  ;;  %v3383_v48 = vpop.eup %3382  ;;  %v1739_v50 = vsel %vm1507_vm1, %v1456_v41, 0.0  ;;  %v1394_v51 = vmul.f32 %v3381_v44, %v4172_v28  ;;  %3398 = vtanh.f32 %v1018_v46 }
  0xfc   :  { %1722 = vadd.xlane.f32.xlu1 %v1721_v52  ;;  %v707_v52 = vpop.f32.mrf.mxu0  ;;  %v3385_v54 = vpop.eup %3384  ;;  %3400 = vtanh.f32 %v1023_v49  ;;  %v1033_v6 = vadd.f32 %v3249_v53, %v4157_v4 }
  0xfd   :  { %v1550_v55 = vsel %vm1507_vm1, %v1393_v47, 0.0  ;;  %v708_v56 = vadd.f32 %v4157_v4, %v707_v52  ;;  %v3387_v58 = vpop.eup %3386  ;;  %v1553_v60 = vsel %vm1507_vm1, %v1394_v51, 0.0  ;;  %v1458_v61 = vmul.f32 %v3385_v54, %v4172_v28 }
  0xfe   :  { %v3156_v63 = vpop.f32.mrf.mxu0  ;;  %v3389_v0 = vpop.eup %3388 }
  0xff   :  { %1533 = vadd.xlane.f32.xlu0 %v1532_v57  ;;  %v1457_v57 = vmul.f32 %v3383_v48, %v4172_v28  ;;  %3402 = vtanh.f32 %v708_v56  ;;  %v1745_v7 = vsel %vm1507_vm1, %v1458_v61, 0.0  ;;  %v1396_v8 = vmul.f32 %v3389_v0, %v4172_v28 }
 0x100   :  { %1536 = vadd.xlane.f32.xlu1 %v1535_v62  ;;  %v1027_v62 = vpop.f32.mrf.mxu1  ;;  %v3391_v5 = vpop.eup %3390  ;;  %3404 = vtanh.f32 %v713_v59  ;;  %v723_v16 = vadd.f32 %v3156_v63, %v4157_v4 }
 0x101   :  { %v1742_v1 = vsel %vm1507_vm1, %v1457_v57, 0.0  ;;  %v1028_v2 = vadd.f32 %v4157_v4, %v1027_v62  ;;  %v3393_v11 = vpop.eup %3392  ;;  %v1559_v17 = vsel %vm1507_vm1, %v1396_v8, 0.0 }
 0x102   :  { %v3252_v10 = vpop.f32.mrf.mxu1  ;;  %v1460_v18 = vmul.f32 %v3393_v11, %v4172_v28 }
 0x103   :  { %1725 = vadd.xlane.f32.xlu0 %v1724_v3  ;;  %v1395_v3 = vmul.f32 %v3387_v58, %v4172_v28  ;;  %3406 = vtanh.f32 %v1028_v2  ;;  %v1043_v26 = vadd.f32 %v3252_v10, %v4157_v4 }
 0x104   :  { %1728 = vadd.xlane.f32.xlu1 %v1727_v9  ;;  %v717_v9 = vpop.f32.mrf.mxu0  ;;  %v3395_v15 = vpop.eup %3394  ;;  %3408 = vtanh.f32 %v1033_v6  ;;  %v1751_v27 = vsel %vm1507_vm1, %v1460_v18, 0.0 }
 0x105   :  { %v1556_v12 = vsel %vm1507_vm1, %v1395_v3, 0.0  ;;  %v718_v13 = vadd.f32 %v4157_v4, %v717_v9  ;;  %v3397_v21 = vpop.eup %3396 }
 0x106   :  { %v3159_v20 = vpop.f32.mrf.mxu0  ;;  %v1398_v29 = vmul.f32 %v3397_v21, %v4172_v28 }
 0x107   :  { %1539 = vadd.xlane.f32.xlu0 %v1538_v14  ;;  %v1459_v14 = vmul.f32 %v3391_v5, %v4172_v28  ;;  %3410 = vtanh.f32 %v718_v13  ;;  %v733_v37 = vadd.f32 %v3159_v20, %v4157_v4 }
 0x108   :  { %1542 = vadd.xlane.f32.xlu1 %v1541_v19  ;;  %v1037_v19 = vpop.f32.mrf.mxu1  ;;  %v3399_v25 = vpop.eup %3398  ;;  %3412 = vtanh.f32 %v723_v16  ;;  %v1565_v38 = vsel %vm1507_vm1, %v1398_v29, 0.0 }
 0x109   :  { %v1748_v22 = vsel %vm1507_vm1, %v1459_v14, 0.0  ;;  %v1038_v23 = vadd.f32 %v4157_v4, %v1037_v19  ;;  %v3401_v32 = vpop.eup %3400 }
 0x10a   :  { %v3255_v31 = vpop.f32.mrf.mxu1  ;;  %v1462_v39 = vmul.f32 %v3401_v32, %v4172_v28 }
 0x10b   :  { %1731 = vadd.xlane.f32.xlu0 %v1730_v24  ;;  %v1397_v24 = vmul.f32 %v3395_v15, %v4172_v28  ;;  %3414 = vtanh.f32 %v1038_v23  ;;  %v1053_v47 = vadd.f32 %v3255_v31, %v4157_v4 }
 0x10c   :  { %1734 = vadd.xlane.f32.xlu1 %v1733_v30  ;;  %v727_v30 = vpop.f32.mrf.mxu0  ;;  %v3403_v36 = vpop.eup %3402  ;;  %3416 = vtanh.f32 %v1043_v26  ;;  %v1757_v48 = vsel %vm1507_vm1, %v1462_v39, 0.0 }
 0x10d   :  { %v1562_v33 = vsel %vm1507_vm1, %v1397_v24, 0.0  ;;  %v728_v34 = vadd.f32 %v4157_v4, %v727_v30  ;;  %v3405_v42 = vpop.eup %3404 }
 0x10e   :  { %v3162_v41 = vpop.f32.mrf.mxu0  ;;  %v1400_v49 = vmul.f32 %v3405_v42, %v4172_v28 }
 0x10f   :  { %1545 = vadd.xlane.f32.xlu0 %v1544_v35  ;;  %v1461_v35 = vmul.f32 %v3399_v25, %v4172_v28  ;;  %3418 = vtanh.f32 %v728_v34  ;;  %v743_v57 = vadd.f32 %v3162_v41, %v4157_v4 }
 0x110   :  { %1548 = vadd.xlane.f32.xlu1 %v1547_v40  ;;  %v1047_v40 = vpop.f32.mrf.mxu1  ;;  %v3407_v46 = vpop.eup %3406  ;;  %3420 = vtanh.f32 %v733_v37  ;;  %v1571_v58 = vsel %vm1507_vm1, %v1400_v49, 0.0 }
 0x111   :  { %v1754_v43 = vsel %vm1507_vm1, %v1461_v35, 0.0  ;;  %v1048_v44 = vadd.f32 %v4157_v4, %v1047_v40  ;;  %v3409_v52 = vpop.eup %3408 }
 0x112   :  { %v3258_v51 = vpop.f32.mrf.mxu1  ;;  %v1464_v59 = vmul.f32 %v3409_v52, %v4172_v28 }
 0x113   :  { %1737 = vadd.xlane.f32.xlu0 %v1736_v45  ;;  %v1399_v45 = vmul.f32 %v3403_v36, %v4172_v28  ;;  %3422 = vtanh.f32 %v1048_v44  ;;  %v1063_v3 = vadd.f32 %v3258_v51, %v4157_v4 }
 0x114   :  { %1740 = vadd.xlane.f32.xlu1 %v1739_v50  ;;  %v737_v50 = vpop.f32.mrf.mxu0  ;;  %v3411_v56 = vpop.eup %3410  ;;  %3424 = vtanh.f32 %v1053_v47  ;;  %v1763_v5 = vsel %vm1507_vm1, %v1464_v59, 0.0 }
 0x115   :  { %v1568_v53 = vsel %vm1507_vm1, %v1399_v45, 0.0  ;;  %v738_v54 = vadd.f32 %v4157_v4, %v737_v50  ;;  %v3413_v62 = vpop.eup %3412 }
 0x116   :  { %v3165_v61 = vpop.f32.mrf.mxu0  ;;  %v1402_v6 = vmul.f32 %v3413_v62, %v4172_v28 }
 0x117   :  { %1551 = vadd.xlane.f32.xlu0 %v1550_v55  ;;  %v1463_v55 = vmul.f32 %v3407_v46, %v4172_v28  ;;  %3426 = vtanh.f32 %v738_v54  ;;  %v753_v14 = vadd.f32 %v3165_v61, %v4157_v4 }
 0x118   :  { %1554 = vadd.xlane.f32.xlu1 %v1553_v60  ;;  %v1057_v60 = vpop.f32.mrf.mxu1  ;;  %v3415_v2 = vpop.eup %3414  ;;  %3428 = vtanh.f32 %v743_v57  ;;  %v1577_v15 = vsel %vm1507_vm1, %v1402_v6, 0.0 }
 0x119   :  { %v1760_v63 = vsel %vm1507_vm1, %v1463_v55, 0.0  ;;  %v1058_v0 = vadd.f32 %v4157_v4, %v1057_v60  ;;  %v3417_v9 = vpop.eup %3416 }
 0x11a   :  { %v3261_v8 = vpop.f32.mrf.mxu1  ;;  %v1466_v16 = vmul.f32 %v3417_v9, %v4172_v28 }
 0x11b   :  { %1743 = vadd.xlane.f32.xlu0 %v1742_v1  ;;  %v1401_v1 = vmul.f32 %v3411_v56, %v4172_v28  ;;  %3430 = vtanh.f32 %v1058_v0  ;;  %v1073_v24 = vadd.f32 %v3261_v8, %v4157_v4 }
 0x11c   :  { %1746 = vadd.xlane.f32.xlu1 %v1745_v7  ;;  %v747_v7 = vpop.f32.mrf.mxu0  ;;  %v3419_v13 = vpop.eup %3418  ;;  %3432 = vtanh.f32 %v1063_v3  ;;  %v1769_v25 = vsel %vm1507_vm1, %v1466_v16, 0.0 }
 0x11d   :  { %v1574_v10 = vsel %vm1507_vm1, %v1401_v1, 0.0  ;;  %v748_v11 = vadd.f32 %v4157_v4, %v747_v7  ;;  %v3421_v19 = vpop.eup %3420 }
 0x11e   :  { %v3168_v18 = vpop.f32.mrf.mxu0  ;;  %v1404_v26 = vmul.f32 %v3421_v19, %v4172_v28 }
 0x11f   :  { %1557 = vadd.xlane.f32.xlu0 %v1556_v12  ;;  %v1465_v12 = vmul.f32 %v3415_v2, %v4172_v28  ;;  %3434 = vtanh.f32 %v748_v11  ;;  %v763_v36 = vadd.f32 %v3168_v18, %v4157_v4 }
 0x120   :  { %1560 = vadd.xlane.f32.xlu1 %v1559_v17  ;;  %v1067_v17 = vpop.f32.mrf.mxu1  ;;  %v3423_v23 = vpop.eup %3422  ;;  %3436 = vtanh.f32 %v753_v14  ;;  %v1583_v37 = vsel %vm1507_vm1, %v1404_v26, 0.0 }
 0x121   :  { %v1766_v20 = vsel %vm1507_vm1, %v1465_v12, 0.0  ;;  %v1068_v21 = vadd.f32 %v4157_v4, %v1067_v17  ;;  %v3425_v30 = vpop.eup %3424 }
 0x122   :  { %v3264_v29 = vpop.f32.mrf.mxu1 }
 0x123   :  { %1749 = vadd.xlane.f32.xlu0 %v1748_v22  ;;  %v1403_v22 = vmul.f32 %v3419_v13, %v4172_v28  ;;  %3438 = vtanh.f32 %v1068_v21  ;;  %v1083_v47 = vadd.f32 %v3264_v29, %v4157_v4 }
 0x124   :  { %1752 = vadd.xlane.f32.xlu1 %v1751_v27  ;;  %v757_v27 = vpop.f32.mrf.mxu0  ;;  %v3427_v35 = vpop.eup %3426  ;;  %3440 = vtanh.f32 %v1073_v24 }
 0x125   :  { %v1580_v31 = vsel %vm1507_vm1, %v1403_v22, 0.0  ;;  %v758_v32 = vadd.f32 %v4157_v4, %v757_v27  ;;  %v1077_v39 = vpop.f32.mrf.mxu1  ;;  %v3429_v40 = vpop.eup %3428  ;;  %v1405_v44 = vmul.f32 %v3427_v35, %v4172_v28 }
 0x126   :  { %v3171_v34 = vpop.f32.mrf.mxu0  ;;  %v1406_v49 = vmul.f32 %v3429_v40, %v4172_v28 }
 0x127   :  { %1563 = vadd.xlane.f32.xlu0 %v1562_v33  ;;  %v1467_v33 = vmul.f32 %v3423_v23, %v4172_v28  ;;  %v3267_v41 = vpop.f32.mrf.mxu1  ;;  %3442 = vtanh.f32 %v758_v32  ;;  %v1586_v55 = vsel %vm1507_vm1, %v1405_v44, 0.0 }
 0x128   :  { %1566 = vadd.xlane.f32.xlu1 %v1565_v38  ;;  %v1468_v38 = vmul.f32 %v3425_v30, %v4172_v28  ;;  %v767_v45 = vpop.f32.mrf.mxu0  ;;  %v3431_v46 = vpop.eup %3430  ;;  %3444 = vtanh.f32 %v763_v36  ;;  %v1093_v51 = vadd.f32 %v3267_v41, %v4157_v4 }
 0x129   :  { %v1772_v42 = vsel %vm1507_vm1, %v1467_v33, 0.0  ;;  %v3433_v50 = vpop.eup %3432  ;;  %v1087_v54 = vpop.f32.mrf.mxu1  ;;  %v1469_v56 = vmul.f32 %v3431_v46, %v4172_v28 }
 0x12a   :  { %v3174_v52 = vpop.f32.mrf.mxu0  ;;  %v1470_v59 = vmul.f32 %v3433_v50, %v4172_v28 }
 0x12b   :  { %1755 = vadd.xlane.f32.xlu0 %v1754_v43  ;;  %v1078_v43 = vadd.f32 %v4157_v4, %v1077_v39  ;;  %v3270_v60 = vpop.f32.mrf.mxu1  ;;  %v1778_v0 = vsel %vm1507_vm1, %v1469_v56, 0.0  ;;  %v783_v11 = vadd.f32 %v3174_v52, %v4157_v4 }
 0x12c   :  { %1758 = vadd.xlane.f32.xlu1 %v1757_v48  ;;  %v1775_v48 = vsel %vm1507_vm1, %v1468_v38, 0.0  ;;  %v3435_v57 = vpop.eup %3434  ;;  %v777_v62 = vpop.f32.mrf.mxu0  ;;  %v1781_v6 = vsel %vm1507_vm1, %v1470_v59, 0.0 }
 0x12d   :  { %3446 = vtanh.f32 %v1078_v43  ;;  %v3437_v61 = vpop.eup %3436  ;;  %v1407_v1 = vmul.f32 %v3435_v57, %v4172_v28  ;;  %v1097_v8 = vpop.f32.mrf.mxu1  ;;  %v778_v22 = vadd.f32 %v4157_v4, %v777_v62 }
 0x12e   :  { %3448 = vtanh.f32 %v1083_v47  ;;  %v3177_v2 = vpop.f32.mrf.mxu0  ;;  %v1408_v7 = vmul.f32 %v3437_v61, %v4172_v28  ;;  %v1098_v26 = vadd.f32 %v4157_v4, %v1097_v8 }
 0x12f   :  { %1569 = vadd.xlane.f32.xlu0 %v1568_v53  ;;  %v773_v53 = vadd.f32 %v3171_v34, %v4157_v4  ;;  %3450 = vtanh.f32 %v1093_v51  ;;  %v3273_v12 = vpop.f32.mrf.mxu1  ;;  %v1592_v13 = vsel %vm1507_vm1, %v1407_v1, 0.0  ;;  %v793_v35 = vadd.f32 %v3177_v2, %v4157_v4  ;;  %v4381_v1 = vld [vmem:[%s5195_s2] ss:$0 sm:$0xff] }
 0x130   :  { %1572 = vadd.xlane.f32.xlu1 %v1571_v58  ;;  %v1589_v58 = vsel %vm1507_vm1, %v1406_v49, 0.0  ;;  %v3439_v3 = vpop.eup %3438  ;;  %v1595_v17 = vsel %vm1507_vm1, %v1408_v7, 0.0  ;;  %v1113_v32 = vadd.f32 %v3273_v12, %v4157_v4 }
 0x131   :  { %3452 = vtanh.f32 %v773_v53  ;;  %v3441_v9 = vpop.eup %3440  ;;  %v1471_v14 = vmul.f32 %v3439_v3, %v4172_v28  ;;  %v1107_v21 = vpop.f32.mrf.mxu1 }
 0x132   :  { %v1472_v18 = vmul.f32 %v3441_v9, %v4172_v28  ;;  %v1108_v47 = vadd.f32 %v4157_v4, %v1107_v21 }
 0x133   :  { %1761 = vadd.xlane.f32.xlu0 %v1760_v63  ;;  %v768_v63 = vadd.f32 %v4157_v4, %v767_v45  ;;  %v1784_v23 = vsel %vm1507_vm1, %v1471_v14, 0.0  ;;  %v3276_v30 = vpop.f32.mrf.mxu1 }
 0x134   :  { %1764 = vadd.xlane.f32.xlu1 %v1763_v5  ;;  %v1088_v5 = vadd.f32 %v4157_v4, %v1087_v54  ;;  %v3443_v16 = vpop.eup %3442  ;;  %v1787_v27 = vsel %vm1507_vm1, %v1472_v18, 0.0 }
 0x135   :  { %3454 = vtanh.f32 %v768_v63  ;;  %v3445_v19 = vpop.eup %3444  ;;  %v1409_v24 = vmul.f32 %v3443_v16, %v4172_v28  ;;  %v2038_v16 = vlaneseq }
 0x136   :  { %3456 = vtanh.f32 %v1088_v5  ;;  %v1410_v29 = vmul.f32 %v3445_v19, %v4172_v28 }
 0x137   :  { %1575 = vadd.xlane.f32.xlu0 %v1574_v10  ;;  %v1103_v10 = vadd.f32 %v3270_v60, %v4157_v4 }
 0x138   :  { %1578 = vadd.xlane.f32.xlu1 %v1577_v15  ;;  %v787_v15 = vpop.f32.mrf.mxu0  ;;  %v1601_v40 = vsel %vm1507_vm1, %v1410_v29, 0.0  ;;  %v4402_v29 = vand.u32 127, %v2038_v16 }
 0x139   :  { %3458 = vtanh.f32 %v1103_v10  ;;  %v788_v44 = vadd.f32 %v4157_v4, %v787_v15 }
 0x13a   :  { %3460 = vtanh.f32 %v783_v11 }
 0x13b   :  { %1767 = vadd.xlane.f32.xlu0 %v1766_v20  ;;  %v3180_v20 = vpop.f32.mrf.mxu0  ;;  %3462 = vtanh.f32 %v778_v22 }
 0x13c   :  { %1770 = vadd.xlane.f32.xlu1 %v1769_v25  ;;  %v3447_v25 = vpop.eup %3446  ;;  %3464 = vtanh.f32 %v1098_v26  ;;  %v803_v52 = vadd.f32 %v3180_v20, %v4157_v4 }
 0x13d   :  { %v797_v33 = vpop.f32.mrf.mxu0  ;;  %v1473_v38 = vmul.f32 %v3447_v25, %v4172_v28  ;;  %3466 = vtanh.f32 %v1113_v32  ;;  %v4398_v25 = vld [vmem:[%s5195_s2 + $0x1] ss:$0 sm:$0xff] }
 0x13e   :  { %3468 = vtanh.f32 %v793_v35  ;;  %v798_v59 = vadd.f32 %v4157_v4, %v797_v33 }
 0x13f   :  { %1581 = vadd.xlane.f32.xlu0 %v1580_v31  ;;  %v3449_v31 = vpop.eup %3448  ;;  %v3183_v39 = vpop.f32.mrf.mxu0  ;;  %3470 = vtanh.f32 %v788_v44 }
 0x140   :  { %1584 = vadd.xlane.f32.xlu1 %v1583_v37  ;;  %v3451_v34 = vpop.eup %3450  ;;  %v1598_v37 = vsel %vm1507_vm1, %v1409_v24, 0.0  ;;  %v1474_v41 = vmul.f32 %v3449_v31, %v4172_v28  ;;  %3472 = vtanh.f32 %v1108_v47  ;;  %v813_v2 = vadd.f32 %v4381_v1, %v3183_v39 }
 0x141   :  { %v3453_v36 = vpop.eup %3452  ;;  %v1476_v43 = vmul.f32 %v3451_v34, %v4172_v28  ;;  %v807_v49 = vpop.f32.mrf.mxu0  ;;  %3474 = vtanh.f32 %v803_v52 }
 0x142   :  { %v1412_v45 = vmul.f32 %v3453_v36, %v4172_v28  ;;  %v3455_v50 = vpop.eup %3454  ;;  %v1793_v51 = vsel %vm1507_vm1, %v1474_v41, 0.0 }
 0x143   :  { %1773 = vadd.xlane.f32.xlu0 %v1772_v42  ;;  %v1117_v42 = vpop.f32.mrf.mxu1  ;;  %v3457_v53 = vpop.eup %3456  ;;  %v1799_v54 = vsel %vm1507_vm1, %v1476_v43, 0.0  ;;  %v1411_v63 = vmul.f32 %v3455_v50, %v4172_v28 }
 0x144   :  { %1776 = vadd.xlane.f32.xlu1 %v1775_v48  ;;  %v1790_v48 = vsel %vm1507_vm1, %v1473_v38, 0.0  ;;  %v3186_v56 = vpop.f32.mrf.mxu0  ;;  %v1118_v62 = vadd.f32 %v4157_v4, %v1117_v42 }
 0x145   :  { %v3279_v46 = vpop.f32.mrf.mxu1  ;;  %v1604_v8 = vsel %vm1507_vm1, %v1411_v63, 0.0 }
 0x146   :  { %v3459_v57 = vpop.eup %3458 }
 0x147   :  { %1587 = vadd.xlane.f32.xlu0 %v1586_v55  ;;  %v1123_v55 = vadd.f32 %v3276_v30, %v4157_v4  ;;  %v1127_v60 = vpop.f32.mrf.mxu1  ;;  %v3461_v61 = vpop.eup %3460  ;;  %v1478_v5 = vmul.f32 %v3459_v57, %v4172_v28  ;;  %v1133_v4 = vadd.f32 %v4381_v1, %v3279_v46 }
 0x148   :  { %1590 = vadd.xlane.f32.xlu1 %v1589_v58  ;;  %v1607_v58 = vsel %vm1507_vm1, %v1412_v45, 0.0  ;;  %v1414_v7 = vmul.f32 %v3461_v61, %v4172_v28  ;;  %v3463_v10 = vpop.eup %3462  ;;  %v1128_v12 = vadd.f32 %v4381_v1, %v1127_v60  ;;  %v2044_v45 = vadd.s32 4294967288, %v4402_v29 }
 0x149   :  { %v3282_v3 = vpop.f32.mrf.mxu1  ;;  %3476 = vtanh.f32 %v1123_v55  ;;  %v3465_v14 = vpop.eup %3464  ;;  %v1805_v15 = vsel %vm1507_vm1, %v1478_v5, 0.0  ;;  %v1413_v22 = vmul.f32 %v3463_v10, %v4172_v28  ;;  %v2072_v10 = vadd.s32 4294967256, %v4402_v29 }
 0x14a   :  { %3478 = vtanh.f32 %v798_v59  ;;  %v3467_v18 = vpop.eup %3466  ;;  %v1613_v19 = vsel %vm1507_vm1, %v1414_v7, 0.0  ;;  %v1477_v26 = vmul.f32 %v4398_v25, %v3465_v14  ;;  %v4435_v59 = vstv %s5196_s3 }
 0x14b   :  { %1779 = vadd.xlane.f32.xlu0 %v1778_v0  ;;  %v1475_v0 = vmul.f32 %v3457_v53, %v4172_v28  ;;  %3480 = vtanh.f32 %v1118_v62  ;;  %v3469_v21 = vpop.eup %3468  ;;  %v1480_v28 = vmul.f32 %v4398_v25, %v3467_v18  ;;  %v1610_v38 = vsel %vm1507_vm1, %v1413_v22, 0.0 }
 0x14c   :  { %1782 = vadd.xlane.f32.xlu1 %v1781_v6  ;;  %v817_v6 = vpop.f32.mrf.mxu0  ;;  %3482 = vtanh.f32 %v813_v2  ;;  %v1416_v34 = vmul.f32 %v4398_v25, %v3469_v21  ;;  %v1802_v41 = vsel %vm1507_vm1, %v1477_v26, 0.0  ;;  %v2051_v7 = vadd.s32 4294967280, %v4402_v29 }
 0x14d   :  { %v1796_v11 = vsel %vm1507_vm1, %v1475_v0, 0.0  ;;  %3484 = vtanh.f32 %v1133_v4  ;;  %v818_v35 = vadd.f32 %v4381_v1, %v817_v6  ;;  %v1811_v47 = vsel %vm1507_vm1, %v1480_v28, 0.0 }
 0x14e   :  { %v3189_v9 = vpop.f32.mrf.mxu0  ;;  %3486 = vtanh.f32 %v1128_v12  ;;  %v1619_v52 = vsel %vm1507_vm1, %v1416_v34, 0.0  ;;  %v2058_v4 = vadd.s32 4294967272, %v4402_v29  ;;  %v2086_v28 = vadd.s32 4294967240, %v4402_v29 }
 0x14f   :  { %1593 = vadd.xlane.f32.xlu0 %v1592_v13  ;;  %v1137_v13 = vpop.f32.mrf.mxu1  ;;  %v833_v42 = vadd.f32 %v4381_v1, %v3189_v9 }
 0x150   :  { %1596 = vadd.xlane.f32.xlu1 %v1595_v17  ;;  %v808_v17 = vadd.f32 %v4381_v1, %v807_v49  ;;  %v827_v24 = vpop.f32.mrf.mxu0  ;;  %v1138_v31 = vadd.f32 %v4381_v1, %v1137_v13 }
 0x151   :  { %v3285_v20 = vpop.f32.mrf.mxu1  ;;  %v828_v53 = vadd.f32 %v4381_v1, %v827_v24 }
 0x152   :  { %3488 = vtanh.f32 %v808_v17  ;;  %v3192_v32 = vpop.f32.mrf.mxu0 }
 0x153   :  { %1785 = vadd.xlane.f32.xlu0 %v1784_v23  ;;  %v823_v23 = vadd.f32 %v4381_v1, %v3186_v56  ;;  %v1147_v36 = vpop.f32.mrf.mxu1 }
 0x154   :  { %1788 = vadd.xlane.f32.xlu1 %v1787_v27  ;;  %v1143_v27 = vadd.f32 %v4381_v1, %v3282_v3  ;;  %v837_v49 = vpop.f32.mrf.mxu0  ;;  %v1148_v56 = vadd.f32 %v4381_v1, %v1147_v36  ;;  %v843_v3 = vadd.f32 %v4381_v1, %v3192_v32  ;;  %v2079_v36 = vadd.s32 4294967248, %v4402_v29 }
 0x155   :  { %3490 = vtanh.f32 %v823_v23  ;;  %v4417_v43 = vpop.f32.mrf.mxu1 }
 0x156   :  { %3492 = vtanh.f32 %v1143_v27  ;;  %v4430_v57 = vpop.f32.mrf.mxu0 }
 0x157   :  { %1599 = vadd.xlane.f32.xlu0 %v1598_v37  ;;  %v3471_v37 = vpop.eup %3470  ;;  %3494 = vtanh.f32 %v1138_v31  ;;  %v1157_v61 = vpop.f32.mrf.mxu1  ;;  %v838_v31 = vadd.f32 %v4381_v1, %v837_v49 }
 0x158   :  { %1602 = vadd.xlane.f32.xlu1 %v1601_v40  ;;  %v3473_v39 = vpop.eup %3472  ;;  %v4413_v40 = vshrl.u32 %v2038_v16, 7  ;;  %3496 = vtanh.f32 %v818_v35  ;;  %v1415_v55 = vmul.f32 %v4398_v25, %v3471_v37  ;;  %v847_v12 = vpop.f32.mrf.mxu0 }
 0x159   :  { %v3475_v44 = vpop.eup %3474  ;;  %v1479_v60 = vmul.f32 %v4398_v25, %v3473_v39  ;;  %3498 = vtanh.f32 %v833_v42  ;;  %v3291_v17 = vpop.f32.mrf.mxu1  ;;  %v1158_v42 = vadd.f32 %v4381_v1, %v1157_v61 }
 0x15a   :  { %v3477_v50 = vpop.eup %3476  ;;  %v4439_v63 = vsub.s32 %v2044_v45, %v4413_v40  ;;  %v1616_v9 = vsel %vm1507_vm1, %v1415_v55, 0.0  ;;  %v4455_v13 = vsub.s32 %v4402_v29, %v4413_v40  ;;  %v4466_v24 = vsub.s32 %v2058_v4, %v4413_v40  ;;  %v3198_v37 = vpop.f32.mrf.mxu0 }
 0x15b   :  { %1791 = vadd.xlane.f32.xlu0 %v1790_v48  ;;  %v1153_v48 = vadd.f32 %v4381_v1, %v3285_v20  ;;  %v1482_v2 = vmul.f32 %v4398_v25, %v3477_v50  ;;  %v1808_v14 = vsel %vm1507_vm1, %v1479_v60, 0.0  ;;  %v4474_v32 = vsub.s32 %v2051_v7, %v4413_v40  ;;  %v1167_v45 = vpop.f32.mrf.mxu1 }
 0x15c   :  { %1794 = vadd.xlane.f32.xlu1 %v1793_v51  ;;  %v4477_v34 = vsub.s32 %v2072_v10, %v4413_v40  ;;  %v2100_v60 = vadd.s32 4294967224, %v4402_v29  ;;  %v2093_v4 = vadd.s32 4294967232, %v4402_v29  ;;  %v857_v7 = vpop.f32.mrf.mxu0 }
 0x15d   :  { %3500 = vtanh.f32 %v1153_v48  ;;  %v1817_v20 = vsel %vm1507_vm1, %v1482_v2, 0.0  ;;  %v3294_v61 = vpop.f32.mrf.mxu1  ;;  %v4502_v2 = vsub.s32 %v2079_v36, %v4413_v40 }
 0x15e   :  { %3502 = vtanh.f32 %v828_v53  ;;  %v1173_v53 = vadd.f32 %v4381_v1, %v3291_v17  ;;  %v3201_v17 = vpop.f32.mrf.mxu0  ;;  %v1183_v36 = vadd.f32 %v4381_v1, %v3294_v61 }
 0x15f   :  { %1800 = vadd.xlane.f32.xlu0 %v1799_v54  ;;  %v3479_v54 = vpop.eup %3478  ;;  %3504 = vtanh.f32 %v1148_v56  ;;  %v4496_v56 = vsub.s32 %v2086_v28, %v4413_v40 }
 0x160   :  { %1608 = vadd.xlane.f32.xlu1 %v1607_v58  ;;  %v3481_v58 = vpop.eup %3480  ;;  %v1417_v16 = vmul.f32 %v4398_v25, %v3479_v54  ;;  %3506 = vtanh.f32 %v843_v3  ;;  %v1168_v3 = vadd.f32 %v4381_v1, %v1167_v45  ;;  %v2107_v45 = vadd.s32 4294967216, %v4402_v29 }
 0x161   :  { %v3483_v62 = vpop.eup %3482  ;;  %3508 = vtanh.f32 %v838_v31  ;;  %v4526_v31 = vsub.s32 %v2093_v4, %v4413_v40 }
 0x162   :  { %v3485_v5 = vpop.eup %3484  ;;  %v1420_v21 = vmul.f32 %v4398_v25, %v3483_v62  ;;  %3510 = vtanh.f32 %v1158_v42 }
 0x163   :  { %1605 = vadd.xlane.f32.xlu0 %v1604_v8  ;;  %v1418_v8 = vmul.f32 %v4398_v25, %v3475_v44  ;;  %v3487_v18 = vpop.eup %3486  ;;  %v1484_v22 = vmul.f32 %v4398_v25, %v3485_v5  ;;  %3512 = vtanh.f32 %v1173_v53 }
 0x164   :  { %1797 = vadd.xlane.f32.xlu1 %v1796_v11  ;;  %v2065_v11 = vadd.s32 4294967264, %v4402_v29  ;;  %v3489_v23 = vpop.eup %3488  ;;  %v1483_v44 = vmul.f32 %v4398_v25, %v3487_v18  ;;  %v1631_v49 = vsel %vm1507_vm1, %v1420_v21, 0.0  ;;  %v4518_v21 = vsub.s32 %v2100_v60, %v4413_v40 }
 0x165   :  { %v1625_v27 = vsel %vm1507_vm1, %v1418_v8, 0.0  ;;  %v1823_v50 = vsel %vm1507_vm1, %v1484_v22, 0.0  ;;  %v858_v22 = vadd.f32 %v4381_v1, %v857_v7 }
 0x166   :  { %v4480_v35 = vsub.s32 %v2065_v11, %v4413_v40  ;;  %v1820_v8 = vsel %vm1507_vm1, %v1483_v44, 0.0 }
 0x167   :  { %1806 = vadd.xlane.f32.xlu0 %v1805_v15  ;;  %v1481_v15 = vmul.f32 %v4398_v25, %v3481_v58  ;;  %v853_v58 = vadd.f32 %v4381_v1, %v4430_v57 }
 0x168   :  { %1614 = vadd.xlane.f32.xlu1 %v1613_v19  ;;  %v4404_v30 = vpop.xlane.xlu0 %1512 }
 0x169   :  { %v4408_v33 = vpop.xlane.xlu1 %1704  ;;  %v1814_v39 = vsel %vm1507_vm1, %v1481_v15, 0.0  ;;  %v863_v15 = vadd.f32 %v4381_v1, %v3198_v37  ;;  %3514 = vtanh.f32 %v853_v58  ;;  %v873_v58 = vadd.f32 %v4381_v1, %v3201_v17 }
 0x16a   :  { %3516 = vtanh.f32 %v1168_v3 }
 0x16b   :  { %1611 = vadd.xlane.f32.xlu0 %v1610_v38  ;;  %v3491_v38 = vpop.eup %3490 }
 0x16c   :  { %1803 = vadd.xlane.f32.xlu1 %v1802_v41  ;;  %v4420_v46 = vpop.xlane.xlu0 %1509  ;;  %v1622_v41 = vsel %vm1507_vm1, %v1417_v16, 0.0  ;;  %v1422_v5 = vmul.f32 %v4398_v25, %v3491_v38 }
 0x16d   :  { %v4424_v51 = vpop.xlane.xlu1 %1518  ;;  %v1894_v60 = vadd.f32 %v4435_v59, %v4420_v46  ;;  %v1895_v46 = vadd.f32 %v4435_v59, %v4404_v30  ;;  %v2128_v30 = vadd.s32 4294967192, %v4402_v29 }
 0x16e   :  { %v4523_v28 = vsel %vm1507_vm1, %v1422_v5, 0.0 }
 0x16f   :  { %1812 = vadd.xlane.f32.xlu0 %v1811_v47  ;;  %v3493_v47 = vpop.eup %3492 }
 0x170   :  { %1620 = vadd.xlane.f32.xlu1 %v1619_v52  ;;  %v4441_v0 = vpop.xlane.xlu0 %1701  ;;  %v1419_v52 = vmul.f32 %v4398_v25, %v3489_v23  ;;  %v3495_v54 = vpop.eup %3494  ;;  %v1486_v57 = vmul.f32 %v4398_v25, %v3493_v47 }
 0x171   :  { %v4446_v6 = vpop.xlane.xlu1 %1710  ;;  %v3497_v62 = vpop.eup %3496  ;;  %v1485_v16 = vmul.f32 %v4398_v25, %v3495_v54 }
 0x172   :  { %v3499_v10 = vpop.eup %3498  ;;  %v1177_v23 = vpop.f32.mrf.mxu1  ;;  %v1829_v38 = vsel %vm1507_vm1, %v1486_v57, 0.0 }
 0x173   :  { %1617 = vadd.xlane.f32.xlu0 %v1616_v9  ;;  %v848_v9 = vadd.f32 %v4381_v1, %v847_v12  ;;  %v3501_v18 = vpop.eup %3500  ;;  %v1421_v12 = vmul.f32 %v4398_v25, %v3497_v62  ;;  %v4535_v44 = vsel %vm1507_vm1, %v1485_v16, 0.0  ;;  %v1178_v47 = vadd.f32 %v4381_v1, %v1177_v23 }
 0x174   :  { %1809 = vadd.xlane.f32.xlu1 %v1808_v14  ;;  %v4460_v19 = vpop.xlane.xlu0 %1707  ;;  %v1628_v14 = vsel %vm1507_vm1, %v1419_v52, 0.0  ;;  %v3297_v57 = vpop.f32.mrf.mxu1 }
 0x175   :  { %v4468_v26 = vpop.xlane.xlu1 %1515  ;;  %3518 = vtanh.f32 %v848_v9  ;;  %v4542_v54 = vsel %vm1507_vm1, %v1421_v12, 0.0  ;;  %v1193_v16 = vadd.f32 %v4381_v1, %v3297_v57 }
 0x176   :  { %3520 = vtanh.f32 %v863_v15  ;;  %v1896_v3 = vadd.f32 %v4435_v59, %v4468_v26  ;;  %v4564_v26 = vsub.s32 %v2107_v45, %v4413_v40  ;;  %v2048_v45 = vrot.slane %v1895_v46, %v4439_v63 }
 0x177   :  { %1818 = vadd.xlane.f32.xlu0 %v1817_v20  ;;  %3522 = vtanh.f32 %v858_v22 }
 0x178   :  { %1626 = vadd.xlane.f32.xlu1 %v1625_v27  ;;  %v4487_v48 = vpop.xlane.xlu0 %1521  ;;  %v3503_v27 = vpop.eup %3502  ;;  %3524 = vtanh.f32 %v1183_v36  ;;  %v1960_v36 = vadd.f32 %v4435_v59, %v4460_v19 }
 0x179   :  { %v4493_v55 = vpop.xlane.xlu1 %1524  ;;  %v3505_v37 = vpop.eup %3504  ;;  %v1423_v62 = vmul.f32 %v4398_v25, %v3503_v27  ;;  %3526 = vtanh.f32 %v1178_v47  ;;  %v2055_v27 = vrot.slane %v1896_v3, %v4474_v32  ;;  %v1897_v47 = vadd.f32 %v4435_v59, %v4424_v51 }
 0x17a   :  { %v3507_v52 = vpop.eup %3506  ;;  %v1487_v61 = vmul.f32 %v4398_v25, %v3505_v37  ;;  %3528 = vtanh.f32 %v873_v58  ;;  %v1898_v37 = vadd.f32 %v4435_v59, %v4487_v48  ;;  %v2473_v57 = vrot.slane %v1960_v36, %v4474_v32 }
 0x17b   :  { %1623 = vadd.xlane.f32.xlu0 %v1622_v41  ;;  %v2114_v41 = vadd.s32 4294967208, %v4402_v29  ;;  %v3509_v17 = vpop.eup %3508  ;;  %v4581_v22 = vsel %vm1507_vm1, %v1423_v62, 0.0 }
 0x17c   :  { %1815 = vadd.xlane.f32.xlu1 %v1814_v39  ;;  %v4510_v11 = vpop.xlane.xlu0 %1713  ;;  %v1424_v39 = vmul.f32 %v4398_v25, %v3499_v10  ;;  %v1426_v10 = vmul.f32 %v4398_v25, %v3507_v52  ;;  %v4578_v12 = vsel %vm1507_vm1, %v1487_v61, 0.0  ;;  %v1425_v52 = vmul.f32 %v4398_v25, %v3509_v17 }
 0x17d   :  { %v4515_v20 = vpop.xlane.xlu1 %1716  ;;  %v4556_v4 = vsub.s32 %v2114_v41, %v4413_v40  ;;  %v1959_v41 = vadd.f32 %v4435_v59, %v4408_v33  ;;  %v4601_v33 = vsub.s32 %v2128_v30, %v4413_v40  ;;  %v2069_v46 = vrot.slane %v1898_v37, %v4480_v35 }
 0x17e   :  { %v4553_v5 = vsel %vm1507_vm1, %v1424_v39, 0.0  ;;  %v1187_v39 = vpop.f32.mrf.mxu1  ;;  %v4595_v19 = vsel %vm1507_vm1, %v1426_v10, 0.0  ;;  %v1962_v10 = vadd.f32 %v4435_v59, %v4510_v11  ;;  %v2062_v30 = vrot.slane %v1897_v47, %v4466_v24 }
 0x17f   :  { %1824 = vadd.xlane.f32.xlu0 %v1823_v50  ;;  %v867_v50 = vpop.f32.mrf.mxu0  ;;  %v1188_v61 = vadd.f32 %v4381_v1, %v1187_v39  ;;  %v1961_v17 = vadd.f32 %v4435_v59, %v4446_v6 }
 0x180   :  { %1632 = vadd.xlane.f32.xlu1 %v1631_v49  ;;  %v4532_v42 = vpop.xlane.xlu0 %1527  ;;  %v1488_v49 = vmul.f32 %v4398_v25, %v3501_v18  ;;  %v868_v7 = vadd.f32 %v4381_v1, %v867_v50  ;;  %v1958_v18 = vadd.f32 %v4435_v59, %v4441_v0  ;;  %v3511_v0 = vpop.eup %3510 }
 0x181   :  { %v4539_v53 = vpop.xlane.xlu1 %1530  ;;  %v3204_v23 = vpop.f32.mrf.mxu0  ;;  %v1489_v37 = vmul.f32 %v4398_v25, %v3511_v0  ;;  %v2483_v0 = vrot.slane %v1962_v10, %v4480_v35 }
 0x182   :  { %v4570_v15 = vsel %vm1507_vm1, %v1488_v49, 0.0  ;;  %3530 = vtanh.f32 %v868_v7  ;;  %v3513_v48 = vpop.eup %3512  ;;  %v2121_v49 = vadd.s32 4294967200, %v4402_v29  ;;  %v883_v36 = vadd.f32 %v4381_v1, %v3204_v23 }
 0x183   :  { %1629 = vadd.xlane.f32.xlu0 %v1628_v14  ;;  %3532 = vtanh.f32 %v1193_v16  ;;  %v4604_v58 = vpop.eup %3514  ;;  %v877_v62 = vpop.f32.mrf.mxu0 }
 0x184   :  { %1821 = vadd.xlane.f32.xlu1 %v1820_v8  ;;  %v4561_v9 = vpop.xlane.xlu0 %1719  ;;  %v2043_v8 = vrot.slane %v1894_v60, %v4455_v13  ;;  %v1899_v60 = vadd.f32 %v4435_v59, %v4493_v55  ;;  %v4611_v3 = vpop.eup %3516  ;;  %v2468_v55 = vrot.slane %v1959_v41, %v4439_v63  ;;  %v878_v6 = vadd.f32 %v4381_v1, %v877_v62 }
 0x185   :  { %v4567_v14 = vpop.xlane.xlu1 %1722  ;;  %v4619_v16 = vpop.eup %3518  ;;  %3534 = vtanh.f32 %v1188_v61 }
 0x186   :  { %v2050_v51 = vsel %vm2049_vm2, %v2048_v45, %v2043_v8  ;;  %v1900_v8 = vadd.f32 %v4435_v59, %v4532_v42  ;;  %v1963_v45 = vadd.f32 %v4435_v59, %v4515_v20  ;;  %v1964_v20 = vadd.f32 %v4435_v59, %v4561_v9 }
 0x187   :  { %1830 = vadd.xlane.f32.xlu0 %v1829_v38  ;;  %v2057_v7 = vsel %vm2056_vm3, %v2055_v27, %v2050_v51  ;;  %v4628_v27 = vpop.eup %3520  ;;  %v1901_v51 = vadd.f32 %v4435_v59, %v4539_v53  ;;  %v4662_v53 = vsub.s32 %v2121_v49, %v4413_v40  ;;  %3536 = vtanh.f32 %v883_v36 }
 0x188   :  { %1638 = vadd.xlane.f32.xlu1 %v4523_v28  ;;  %v1534_v50 = vpop.xlane.xlu0 %1533  ;;  %v2464_v28 = vrot.slane %v1958_v18, %v4455_v13  ;;  %v4638_v39 = vpop.eup %3522  ;;  %v2064_v41 = vsel %vm2063_vm4, %v2062_v30, %v2057_v7  ;;  %v2488_v9 = vrot.slane %v1963_v45, %v4477_v34  ;;  %v1965_v61 = vadd.f32 %v4435_v59, %v4567_v14 }
 0x189   :  { %v4597_v38 = vpop.xlane.xlu1 %1536  ;;  %v4645_v47 = vpop.eup %3524  ;;  %v2071_v23 = vsel %vm2070_vm5, %v2069_v46, %v2064_v41  ;;  %v1902_v62 = vadd.f32 %v4435_v59, %v1534_v50  ;;  %v2090_v49 = vrot.slane %v1901_v51, %v4496_v56  ;;  %3538 = vtanh.f32 %v878_v6 }
 0x18a   :  { %v2469_v42 = vsel %vm2049_vm2, %v2468_v55, %v2464_v28  ;;  %v2478_v28 = vrot.slane %v1961_v17, %v4466_v24  ;;  %v4659_v46 = vpop.eup %3526 }
 0x18b   :  { %1635 = vadd.xlane.f32.xlu0 %v4542_v54  ;;  %v4633_v54 = vsel %vm1507_vm1, %v1425_v52, 0.0  ;;  %v2474_v52 = vsel %vm2056_vm3, %v2473_v57, %v2469_v42  ;;  %v3300_v57 = vpop.f32.mrf.mxu1  ;;  %v4666_v30 = vpop.eup %3528  ;;  %v2097_v36 = vrot.slane %v1902_v62, %v4526_v31 }
 0x18c   :  { %1827 = vadd.xlane.f32.xlu1 %v4535_v44  ;;  %v1726_v18 = vpop.xlane.xlu0 %1725  ;;  %v2076_v44 = vrot.slane %v1899_v60, %v4477_v34  ;;  %v2083_v60 = vrot.slane %v1900_v8, %v4502_v2  ;;  %v1203_v55 = vadd.f32 %v4381_v1, %v3300_v57  ;;  %v4706_v57 = vpop.f32.mrf.mxu0 }
 0x18d   :  { %v4630_v11 = vpop.xlane.xlu1 %1728  ;;  %v1966_v41 = vadd.f32 %v4435_v59, %v1726_v18 }
 0x18e   :  { %v2078_v50 = vsel %vm2077_vm6, %v2076_v44, %v2071_v23  ;;  %v2493_v44 = vrot.slane %v1964_v20, %v4502_v2  ;;  %v2142_v23 = vadd.s32 4294967176, %v4402_v29  ;;  %3540 = vtanh.f32 %v1203_v55 }
 0x18f   :  { %1836 = vadd.xlane.f32.xlu0 %v4570_v15  ;;  %v1492_v15 = vmul.f32 %v4398_v25, %v3513_v48  ;;  %v1903_v48 = vadd.f32 %v4435_v59, %v4597_v38  ;;  %v4678_v8 = vpop.eup %3530  ;;  %v2085_v42 = vsel %vm2084_vm7, %v2083_v60, %v2078_v50  ;;  %v1838_v38 = vsel %vm1507_vm1, %v1489_v37, 0.0 }
 0x190   :  { %1644 = vadd.xlane.f32.xlu1 %v4553_v5  ;;  %v1540_v7 = vpop.xlane.xlu0 %1539  ;;  %v2479_v5 = vsel %vm2063_vm4, %v2478_v28, %v2474_v52  ;;  %v2498_v28 = vrot.slane %v1965_v61, %v4496_v56  ;;  %v2092_v37 = vsel %vm2091_vm8, %v2090_v49, %v2085_v42 }
 0x191   :  { %v1543_v10 = vpop.xlane.xlu1 %1542  ;;  %v2484_v17 = vsel %vm2070_vm5, %v2483_v0, %v2479_v5  ;;  %v1904_v14 = vadd.f32 %v4435_v59, %v1540_v7  ;;  %v4690_v0 = vpop.eup %3532  ;;  %v1847_v18 = vsel %vm1507_vm1, %v1492_v15, 0.0  ;;  %v2104_v60 = vrot.slane %v1903_v48, %v4518_v21 }
 0x192   :  { %v2489_v51 = vsel %vm2077_vm6, %v2488_v9, %v2484_v17  ;;  %v2099_v62 = vsel %vm2098_vm9, %v2097_v36, %v2092_v37  ;;  %v2503_v7 = vrot.slane %v1966_v41, %v4526_v31  ;;  %v1905_v6 = vadd.f32 %v4435_v59, %v1543_v10  ;;  %v1197_v5 = vpop.f32.mrf.mxu1 }
 0x193   :  { %1641 = vadd.xlane.f32.xlu0 %v4581_v22  ;;  %v1428_v22 = vmul.f32 %v4398_v25, %v4604_v58  ;;  %v1967_v58 = vadd.f32 %v4435_v59, %v4630_v11  ;;  %v2494_v20 = vsel %vm2084_vm7, %v2493_v44, %v2489_v51  ;;  %v2111_v15 = vrot.slane %v1904_v14, %v4564_v26 }
 0x194   :  { %1833 = vadd.xlane.f32.xlu1 %v4578_v12  ;;  %v1732_v45 = vpop.xlane.xlu0 %1731  ;;  %v2135_v12 = vadd.s32 4294967184, %v4402_v29  ;;  %v1427_v10 = vmul.f32 %v4398_v25, %v4619_v16  ;;  %v2499_v49 = vsel %vm2091_vm8, %v2498_v28, %v2494_v20  ;;  %v2106_v61 = vsel %vm2105_vm10, %v2104_v60, %v2099_v62  ;;  %v4723_v42 = vpop.f32.mrf.mxu1 }
 0x195   :  { %v1735_v52 = vpop.xlane.xlu1 %1734  ;;  %v1968_v9 = vadd.f32 %v4435_v59, %v1732_v45  ;;  %v1655_v50 = vsel %vm1507_vm1, %v1428_v22, 0.0  ;;  %v2508_v17 = vrot.slane %v1967_v58, %v4518_v21  ;;  %v2504_v55 = vsel %vm2098_vm9, %v2503_v7, %v2499_v49  ;;  %v887_v45 = vpop.f32.mrf.mxu0 }
 0x196   :  { %v4721_v48 = vsub.s32 %v2135_v12, %v4413_v40  ;;  %v2118_v44 = vrot.slane %v1905_v6, %v4556_v4  ;;  %v1969_v16 = vadd.f32 %v4435_v59, %v1735_v52  ;;  %v2113_v14 = vsel %vm2112_vm11, %v2111_v15, %v2106_v61 }
 0x197   :  { %1647 = vadd.xlane.f32.xlu0 %v4633_v54  ;;  %v2513_v22 = vrot.slane %v1968_v9, %v4564_v26  ;;  %v1652_v12 = vsel %vm1507_vm1, %v1427_v10, 0.0  ;;  %v1198_v52 = vadd.f32 %v4381_v1, %v1197_v5  ;;  %v2509_v60 = vsel %vm2105_vm10, %v2508_v17, %v2504_v55 }
 0x198   :  { %1650 = vadd.xlane.f32.xlu1 %v4595_v19  ;;  %v1546_v29 = vpop.xlane.xlu0 %1545  ;;  %v4715_v19 = vsub.s32 %v2142_v23, %v4413_v40  ;;  %v1491_v37 = vmul.f32 %v4398_v25, %v4611_v3  ;;  %v888_v58 = vadd.f32 %v4381_v1, %v887_v45  ;;  %v2518_v20 = vrot.slane %v1969_v16, %v4556_v4 }
 0x199   :  { %v1549_v11 = vpop.xlane.xlu1 %1548  ;;  %v1906_v54 = vadd.f32 %v4435_v59, %v1546_v29  ;;  %v2120_v7 = vsel %vm2119_vm12, %v2118_v44, %v2113_v14  ;;  %v1207_v29 = vpop.f32.mrf.mxu1  ;;  %v2514_v15 = vsel %vm2112_vm11, %v2513_v22, %v2509_v60  ;;  %3542 = vtanh.f32 %v1198_v52 }
 0x19a   :  { %v1907_v36 = vadd.f32 %v4435_v59, %v1549_v11  ;;  %v1493_v17 = vmul.f32 %v4398_v25, %v4659_v46  ;;  %v1844_v55 = vsel %vm1507_vm1, %v1491_v37, 0.0  ;;  %v1430_v44 = vmul.f32 %v4398_v25, %v4628_v27 }
 0x19b   :  { %1848 = vadd.xlane.f32.xlu0 %v1847_v18  ;;  %v2125_v40 = vrot.slane %v1906_v54, %v4662_v53  ;;  %v4733_v18 = vpop.eup %3534  ;;  %v1208_v16 = vadd.f32 %v4381_v1, %v1207_v29  ;;  %3544 = vtanh.f32 %v888_v58 }
 0x19c   :  { %1839 = vadd.xlane.f32.xlu1 %v1838_v38  ;;  %v1738_v41 = vpop.xlane.xlu0 %1737  ;;  %v1429_v38 = vmul.f32 %v4398_v25, %v4638_v39  ;;  %v4739_v28 = vpop.eup %3536  ;;  %v2132_v62 = vrot.slane %v1907_v36, %v4601_v33  ;;  %v1850_v52 = vsel %vm1507_vm1, %v1493_v17, 0.0  ;;  %v1661_v58 = vsel %vm1507_vm1, %v1430_v44, 0.0 }
 0x19d   :  { %v1741_v23 = vpop.xlane.xlu1 %1740  ;;  %v1970_v51 = vadd.f32 %v4435_v59, %v1738_v41  ;;  %v2127_v9 = vsel %vm2126_vm13, %v2125_v40, %v2120_v7  ;;  %v3539_v49 = vpop.eup %3538  ;;  %v2519_v41 = vsel %vm2119_vm12, %v2518_v20, %v2514_v15  ;;  %v893_v20 = vadd.f32 %v4381_v1, %v4706_v57 }
 0x19e   :  { %v1971_v6 = vadd.f32 %v4435_v59, %v1741_v23  ;;  %v1658_v10 = vsel %vm1507_vm1, %v1429_v38, 0.0  ;;  %v2134_v46 = vsel %vm2133_vm14, %v2132_v62, %v2127_v9  ;;  %v1431_v38 = vmul.f32 %v4398_v25, %v4678_v8  ;;  %v4774_v37 = vpop.eup %3540 }
 0x19f   :  { %1653 = vadd.xlane.f32.xlu0 %v1652_v12  ;;  %v2523_v11 = vrot.slane %v1970_v51, %v4662_v53  ;;  %v1494_v7 = vmul.f32 %v4398_v25, %v4645_v47  ;;  %3546 = vtanh.f32 %v1208_v16  ;;  %v1495_v47 = vmul.f32 %v4398_v25, %v4733_v18 }
 0x1a0   :  { %1656 = vadd.xlane.f32.xlu1 %v1655_v50  ;;  %v1552_v39 = vpop.xlane.xlu0 %1551  ;;  %v3210_v50 = vpop.f32.mrf.mxu0  ;;  %v2528_v36 = vrot.slane %v1971_v6, %v4601_v33  ;;  %3548 = vtanh.f32 %v893_v20  ;;  %v1432_v17 = vmul.f32 %v4398_v25, %v4666_v30 }
 0x1a1   :  { %v1555_v3 = vpop.xlane.xlu1 %1554  ;;  %v1908_v54 = vadd.f32 %v4435_v59, %v1552_v39  ;;  %v2524_v22 = vsel %vm2126_vm13, %v2523_v11, %v2519_v41  ;;  %v3306_v6 = vpop.f32.mrf.mxu1  ;;  %v1856_v18 = vsel %vm1507_vm1, %v1495_v47, 0.0 }
 0x1a2   :  { %v1909_v5 = vadd.f32 %v4435_v59, %v1555_v3  ;;  %v897_v60 = vpop.f32.mrf.mxu0  ;;  %v2529_v8 = vsel %vm2133_vm14, %v2528_v36, %v2524_v22  ;;  %v1664_v3 = vsel %vm1507_vm1, %v1431_v38, 0.0  ;;  %v1433_v36 = vmul.f32 %v4398_v25, %v3539_v49 }
 0x1a3   :  { %v2139_v61 = vrot.slane %v1908_v54, %v4721_v48  ;;  %1659 = vadd.xlane.f32.xlu0 %v1658_v10  ;;  %v898_v57 = vadd.f32 %v4381_v1, %v897_v60  ;;  %v1853_v10 = vsel %vm1507_vm1, %v1494_v7, 0.0  ;;  %v1667_v30 = vsel %vm1507_vm1, %v1432_v17, 0.0 }
 0x1a4   :  { %v2146_v45 = vrot.slane %v1909_v5, %v4715_v19  ;;  %1845 = vadd.xlane.f32.xlu1 %v1844_v55  ;;  %v1744_v14 = vpop.xlane.xlu0 %1743  ;;  %v3213_v54 = vpop.f32.mrf.mxu0  ;;  %v1213_v5 = vadd.f32 %v4381_v1, %v4723_v42  ;;  %v1223_v22 = vadd.f32 %v4381_v1, %v3306_v6  ;;  %v1434_v38 = vmul.f32 %v4398_v25, %v4739_v28 }
 0x1a5   :  { %v2141_v40 = vsel %vm2140_vm15, %v2139_v61, %v2134_v46  ;;  %v1747_v23 = vpop.xlane.xlu1 %1746  ;;  %v1972_v51 = vadd.f32 %v4435_v59, %v1744_v14  ;;  %v1217_v61 = vpop.f32.mrf.mxu1  ;;  %3550 = vtanh.f32 %v898_v57  ;;  %v903_v46 = vadd.f32 %v4381_v1, %v3210_v50 }
 0x1a6   :  { %v2148_v27 = vsel %vm2147_vm0, %v2146_v45, %v2141_v40  ;;  %v1973_v12 = vadd.f32 %v4435_v59, %v1747_v23  ;;  %v1218_v16 = vadd.f32 %v4381_v1, %v1217_v61  ;;  %v907_v42 = vpop.f32.mrf.mxu0  ;;  %v3543_v45 = vpop.eup %3542  ;;  %3552 = vtanh.f32 %v1213_v5 }
 0x1a7   :  { %2149 = vst [vmem:[#allocation3] ss:$8 sm:$0x1] %v2148_v27  ;;  %v2533_v62 = vrot.slane %v1972_v51, %v4721_v48  ;;  %1851 = vadd.xlane.f32.xlu0 %v1850_v52  ;;  %v3309_v41 = vpop.f32.mrf.mxu1  ;;  %v1496_v14 = vmul.f32 %v4398_v25, %v4690_v0  ;;  %v908_v49 = vadd.f32 %v4381_v1, %v907_v42  ;;  %v1670_v27 = vsel %vm1507_vm1, %v1433_v36, 0.0 }
 0x1a8   :  { %v2538_v39 = vrot.slane %v1973_v12, %v4715_v19  ;;  %1662 = vadd.xlane.f32.xlu1 %v1661_v58  ;;  %v4784_v29 = vpop.xlane.xlu0 %1557  ;;  %v3545_v51 = vpop.eup %3544  ;;  %3554 = vtanh.f32 %v1218_v16  ;;  %v1497_v50 = vmul.f32 %v4398_v25, %v3543_v45  ;;  %v913_v60 = vadd.f32 %v4381_v1, %v3213_v54 }
 0x1a9   :  { %v2534_v15 = vsel %vm2140_vm15, %v2533_v62, %v2529_v8  ;;  %v4787_v9 = vpop.xlane.xlu1 %1560  ;;  %v1227_v12 = vpop.f32.mrf.mxu1  ;;  %3556 = vtanh.f32 %v903_v46  ;;  %v1859_v0 = vsel %vm1507_vm1, %v1496_v14, 0.0  ;;  %v1435_v6 = vmul.f32 %v4398_v25, %v3545_v51 }
 0x1aa   :  { %v2539_v11 = vsel %vm2147_vm0, %v2538_v39, %v2534_v15  ;;  %v3216_v52 = vpop.f32.mrf.mxu0  ;;  %3558 = vtanh.f32 %v1223_v22  ;;  %v1228_v58 = vadd.f32 %v4381_v1, %v1227_v12  ;;  %v1862_v7 = vsel %vm1507_vm1, %v1497_v50, 0.0  ;;  %v3580_v50 = vld [vmem:[%s5195_s2] ss:$0 sm:$0xff] }
 0x1ab   :  { %2541 = vst [vmem:[#allocation3 + $0x4] ss:$8 sm:$0x1] %v2539_v11  ;;  %1665 = vadd.xlane.f32.xlu0 %v1664_v3  ;;  %3560 = vtanh.f32 %v908_v49  ;;  %v3312_v8 = vpop.f32.mrf.mxu1  ;;  %v1673_v28 = vsel %vm1507_vm1, %v1434_v38, 0.0  ;;  %v1498_v57 = vmul.f32 %v4398_v25, %v4774_v37  ;;  %v1233_v3 = vadd.f32 %v4381_v1, %v3309_v41 }
 0x1ac   :  { %1854 = vadd.xlane.f32.xlu1 %v1853_v10  ;;  %v4799_v55 = vpop.xlane.xlu0 %1749  ;;  %v917_v39 = vpop.f32.mrf.mxu0  ;;  %3562 = vtanh.f32 %v913_v60  ;;  %v1676_v10 = vsel %vm1507_vm1, %v1435_v6, 0.0  ;;  %v923_v42 = vadd.f32 %v4381_v1, %v3216_v52  ;;  %v1163_v12 = vadd.f32 %v3580_v50, %v4417_v43 }
 0x1ad   :  { %v4801_v44 = vpop.xlane.xlu1 %1752  ;;  %v3547_v15 = vpop.eup %3546  ;;  %3564 = vtanh.f32 %v1228_v58  ;;  %v918_v5 = vadd.f32 %v4381_v1, %v917_v39  ;;  %v1865_v16 = vsel %vm1507_vm1, %v1498_v57, 0.0  ;;  %v1911_v58 = vadd.f32 %v4435_v59, %v4787_v9 }
 0x1ae   :  { %v3549_v11 = vpop.eup %3548  ;;  %v1499_v17 = vmul.f32 %v4398_v25, %v3547_v15  ;;  %v1237_v61 = vpop.f32.mrf.mxu1  ;;  %3566 = vtanh.f32 %v1233_v3 }
 0x1af   :  { %1857 = vadd.xlane.f32.xlu0 %v1856_v18  ;;  %v1436_v37 = vmul.f32 %v4398_v25, %v3549_v11  ;;  %3568 = vtanh.f32 %v918_v5  ;;  %v1238_v46 = vadd.f32 %v4381_v1, %v1237_v61  ;;  %v1974_v11 = vadd.f32 %v4435_v59, %v4799_v55 }
 0x1b0   :  { %1668 = vadd.xlane.f32.xlu1 %v1667_v30  ;;  %v4811_v40 = vpop.xlane.xlu0 %1563  ;;  %v1868_v30 = vsel %vm1507_vm1, %v1499_v17, 0.0  ;;  %3570 = vtanh.f32 %v923_v42 }
 0x1b1   :  { %v4813_v23 = vpop.xlane.xlu1 %1566  ;;  %v1679_v49 = vsel %vm1507_vm1, %v1436_v37, 0.0  ;;  %3572 = vtanh.f32 %v1238_v46  ;;  %v1912_v43 = vadd.f32 %v4435_v59, %v4811_v40 }
 0x1b2   :  { %v3551_v18 = vpop.eup %3550  ;;  %3574 = vtanh.f32 %v1163_v12  ;;  %v1913_v61 = vadd.f32 %v4435_v59, %v4813_v23  ;;  %v4888_v23 = vld [vmem:[%s5195_s2 + $0x1] ss:$0 sm:$0xff]  ;;  %s3604_s2 = smov [#allocation3]  }
 0x1b3   :  { %1671 = vadd.xlane.f32.xlu0 %v1670_v27  ;;  %v3553_v36 = vpop.eup %3552  ;;  %v1437_v14 = vmul.f32 %v4398_v25, %v3551_v18  ;;  %s2843_s21 = sshll.u32 %s3604_s2, 4  ;;  %s2844_s21 = int_to_ptr.vmem [resolvable:$true] %s2843_s21 }
 0x1b4   :  { %1860 = vadd.xlane.f32.xlu1 %v1859_v0  ;;  %v4822_v20 = vpop.xlane.xlu0 %1755  ;;  %v1500_v51 = vmul.f32 %v4398_v25, %v3553_v36  ;;  %v1243_v0 = vadd.f32 %v3580_v50, %v3312_v8  ;;  %s3582_s22 = scalar_lea.vmem %s2844_s21, 128  ;;  %p3587_p1 = scmp.lt.s32.totalorder %s2844_s21, %s2844_s21 }
 0x1b5   :  { %v4824_v62 = vpop.xlane.xlu1 %1758  ;;  %v3555_v22 = vpop.eup %3554  ;;  %v1682_v6 = vsel %vm1507_vm1, %v1437_v14, 0.0  ;;  %v1976_v55 = vadd.f32 %v4435_v59, %v4822_v20  ;;  %v2562_v20 = vrot.slane %v1974_v11, %v4455_v13  ;;  %p3583_p0 = scmp.ne.s32.totalorder %s2844_s21, %s3582_s22  ;;  %p3588_p2 = scmp.lt.s32.totalorder %s3582_s22, %s3582_s22 }
 0x1b6   :  { %v3557_v27 = vpop.eup %3556  ;;  %v1501_v39 = vmul.f32 %v4398_v25, %v3555_v22  ;;  %v1871_v15 = vsel %vm1507_vm1, %v1500_v51, 0.0  ;;  %3576 = vtanh.f32 %v1243_v0  ;;  %v1977_v50 = vadd.f32 %v4435_v59, %v4824_v62 }
 0x1b7   :  { %1863 = vadd.xlane.f32.xlu0 %v1862_v7  ;;  %v3559_v52 = vpop.eup %3558  ;;  %v1910_v7 = vadd.f32 %v4435_v59, %v4784_v29  ;;  %v1438_v8 = vmul.f32 %v4398_v25, %v3557_v27  ;;  %v1975_v29 = vadd.f32 %v4435_v59, %v4801_v44  ;;  %v2179_v44 = vrot.slane %v1912_v43, %v4474_v32  ;;  %p3589_p3 = por %p3588_p2, %p3587_p1 }
 0x1b8   :  { %1674 = vadd.xlane.f32.xlu1 %v1673_v28  ;;  %v1570_v47 = vpop.xlane.xlu0 %1569  ;;  %v3561_v60 = vpop.eup %3560  ;;  %v1502_v9 = vmul.f32 %v4398_v25, %v3559_v52  ;;  %v1874_v18 = vsel %vm1507_vm1, %v1501_v39, 0.0  ;;  %v2184_v27 = vrot.slane %v1913_v61, %v4466_v24  ;;  %v2571_v0 = vrot.slane %v1976_v55, %v4474_v32 }
 0x1b9   :  { %v4833_v54 = vpop.xlane.xlu1 %1572  ;;  %v3563_v57 = vpop.eup %3562  ;;  %v1439_v40 = vmul.f32 %v4398_v25, %v3561_v60  ;;  %v2170_v17 = vrot.slane %v1910_v7, %v4455_v13  ;;  %v1685_v37 = vsel %vm1507_vm1, %v1438_v8, 0.0  ;;  %p3590_p4 = pnand %p3589_p3, %p3583_p0 }
 0x1ba   :  { %v3565_v5 = vpop.eup %3564  ;;  %v1877_v36 = vsel %vm1507_vm1, %v1502_v9, 0.0  ;;  %v1440_v42 = vmul.f32 %v4888_v23, %v3563_v57  ;;  %v1915_v12 = vadd.f32 %v4435_v59, %v4833_v54 }
 0x1bb   :  { %1677 = vadd.xlane.f32.xlu0 %v1676_v10  ;;  %v2174_v10 = vrot.slane %v1911_v58, %v4439_v63  ;;  %v3567_v46 = vpop.eup %3566  ;;  %v1688_v14 = vsel %vm1507_vm1, %v1439_v40, 0.0  ;;  %v1503_v22 = vmul.f32 %v4888_v23, %v3565_v5 }
 0x1bc   :  { %1866 = vadd.xlane.f32.xlu1 %v1865_v16  ;;  %v4841_v41 = vpop.xlane.xlu0 %1761  ;;  %v1914_v16 = vadd.f32 %v4435_v59, %v1570_v47  ;;  %v1691_v39 = vsel %vm1507_vm1, %v1440_v42, 0.0  ;;  %v1504_v8 = vmul.f32 %v4888_v23, %v3567_v46 }
 0x1bd   :  { %v4843_v45 = vpop.xlane.xlu1 %1764  ;;  %v2175_v51 = vsel %vm2049_vm2, %v2174_v10, %v2170_v17  ;;  %v1978_v58 = vadd.f32 %v4435_v59, %v4841_v41  ;;  %v2576_v41 = vrot.slane %v1977_v50, %v4466_v24 }
 0x1be   :  { %v2180_v52 = vsel %vm2056_vm3, %v2179_v44, %v2175_v51  ;;  %v2189_v60 = vrot.slane %v1914_v16, %v4480_v35  ;;  %v1979_v11 = vadd.f32 %v4435_v59, %v4843_v45 }
 0x1bf   :  { %1869 = vadd.xlane.f32.xlu0 %v1868_v30  ;;  %v2566_v30 = vrot.slane %v1975_v29, %v4439_v63  ;;  %v2194_v29 = vrot.slane %v1915_v12, %v4477_v34  ;;  %v2581_v10 = vrot.slane %v1978_v58, %v4480_v35 }
 0x1c0   :  { %1680 = vadd.xlane.f32.xlu1 %v1679_v49  ;;  %v1576_v1 = vpop.xlane.xlu0 %1575  ;;  %v3569_v49 = vpop.eup %3568 }
 0x1c1   :  { %v4854_v38 = vpop.xlane.xlu1 %1578  ;;  %v1916_v7 = vadd.f32 %v4435_v59, %v1576_v1  ;;  %v3571_v62 = vpop.eup %3570  ;;  %v2567_v43 = vsel %vm2049_vm2, %v2566_v30, %v2562_v20  ;;  %v1441_v9 = vmul.f32 %v4888_v23, %v3569_v49  ;;  %v2185_v1 = vsel %vm2063_vm4, %v2184_v27, %v2180_v52 }
 0x1c2   :  { %v3573_v57 = vpop.eup %3572  ;;  %v2572_v40 = vsel %vm2056_vm3, %v2571_v0, %v2567_v43  ;;  %v2190_v5 = vsel %vm2070_vm5, %v2189_v60, %v2185_v1  ;;  %v1917_v17 = vadd.f32 %v4435_v59, %v4854_v38  ;;  %v1442_v42 = vmul.f32 %v4888_v23, %v3571_v62 }
 0x1c3   :  { %1683 = vadd.xlane.f32.xlu0 %v1682_v6  ;;  %v2199_v61 = vrot.slane %v1916_v7, %v4502_v2  ;;  %v3575_v16 = vpop.eup %3574  ;;  %v2586_v38 = vrot.slane %v1979_v11, %v4477_v34  ;;  %v2577_v30 = vsel %vm2063_vm4, %v2576_v41, %v2572_v40  ;;  %v2195_v20 = vsel %vm2077_vm6, %v2194_v29, %v2190_v5 }
 0x1c4   :  { %1872 = vadd.xlane.f32.xlu1 %v1871_v15  ;;  %v1768_v28 = vpop.xlane.xlu0 %1767  ;;  %v1880_v15 = vsel %vm1507_vm1, %v1503_v22, 0.0  ;;  %v3577_v46 = vpop.eup %3576  ;;  %v1490_v58 = vmul.f32 %v4888_v23, %v3575_v16 }
 0x1c5   :  { %v4871_v3 = vpop.xlane.xlu1 %1770  ;;  %v2200_v51 = vsel %vm2084_vm7, %v2199_v61, %v2195_v20 }
 0x1c6   :  { %v1981_v22 = vadd.f32 %v4435_v59, %v4871_v3 }
 0x1c7   :  { %1875 = vadd.xlane.f32.xlu0 %v1874_v18  ;;  %v1980_v18 = vadd.f32 %v4435_v59, %v1768_v28  ;;  %v1505_v28 = vmul.f32 %v4888_v23, %v3573_v57 }
 0x1c8   :  { %1686 = vadd.xlane.f32.xlu1 %v1685_v37  ;;  %v1582_v25 = vpop.xlane.xlu0 %1581  ;;  %v1883_v37 = vsel %vm1507_vm1, %v1504_v8, 0.0  ;;  %v2596_v62 = vrot.slane %v1981_v22, %v4496_v56 }
 0x1c9   :  { %v1585_v47 = vpop.xlane.xlu1 %1584  ;;  %v1918_v44 = vadd.f32 %v4435_v59, %v1582_v25  ;;  %v2582_v25 = vsel %vm2070_vm5, %v2581_v10, %v2577_v30  ;;  %v2591_v27 = vrot.slane %v1980_v18, %v4502_v2  ;;  %v1886_v7 = vsel %vm1507_vm1, %v1505_v28, 0.0 }
 0x1ca   :  { %v1919_v49 = vadd.f32 %v4435_v59, %v1585_v47  ;;  %v2587_v3 = vsel %vm2077_vm6, %v2586_v38, %v2582_v25  ;;  %v1697_v47 = vsel %vm1507_vm1, %v1442_v42, 0.0 }
 0x1cb   :  { %1689 = vadd.xlane.f32.xlu0 %v1688_v14  ;;  %v2204_v14 = vrot.slane %v1917_v17, %v4496_v56  ;;  %v2209_v50 = vrot.slane %v1918_v44, %v4526_v31  ;;  %v2592_v8 = vsel %vm2084_vm7, %v2591_v27, %v2587_v3 }
 0x1cc   :  { %1878 = vadd.xlane.f32.xlu1 %v1877_v36  ;;  %v1774_v6 = vpop.xlane.xlu0 %1773  ;;  %v1694_v36 = vsel %vm1507_vm1, %v1441_v9, 0.0  ;;  %v2214_v43 = vrot.slane %v1919_v49, %v4518_v21  ;;  %v2597_v10 = vsel %vm2091_vm8, %v2596_v62, %v2592_v8 }
 0x1cd   :  { %v1777_v54 = vpop.xlane.xlu1 %1776  ;;  %v1982_v12 = vadd.f32 %v4435_v59, %v1774_v6  ;;  %v2205_v6 = vsel %vm2091_vm8, %v2204_v14, %v2200_v51 }
 0x1ce   :  { %v2210_v9 = vsel %vm2098_vm9, %v2209_v50, %v2205_v6 }
 0x1cf   :  { %1881 = vadd.xlane.f32.xlu0 %v1880_v15  ;;  %v1983_v15 = vadd.f32 %v4435_v59, %v1777_v54  ;;  %v2601_v57 = vrot.slane %v1982_v12, %v4526_v31  ;;  %v1841_v54 = vsel %vm1507_vm1, %v1490_v58, 0.0  ;;  %v2215_v17 = vsel %vm2105_vm10, %v2214_v43, %v2210_v9 }
 0x1d0   :  { %1692 = vadd.xlane.f32.xlu1 %v1691_v39  ;;  %v1588_v55 = vpop.xlane.xlu0 %1587  ;;  %v1506_v39 = vmul.f32 %v4888_v23, %v3577_v46 }
 0x1d1   :  { %v1591_v45 = vpop.xlane.xlu1 %1590  ;;  %v1920_v0 = vadd.f32 %v4435_v59, %v1588_v55  ;;  %v2606_v5 = vrot.slane %v1983_v15, %v4518_v21  ;;  %v2602_v18 = vsel %vm2098_vm9, %v2601_v57, %v2597_v10 }
 0x1d2   :  { %v1921_v41 = vadd.f32 %v4435_v59, %v1591_v45  ;;  %v1889_v61 = vsel %vm1507_vm1, %v1506_v39, 0.0 }
 0x1d3   :  { %1695 = vadd.xlane.f32.xlu0 %v1694_v36  ;;  %v2219_v23 = vrot.slane %v1920_v0, %v4564_v26  ;;  %v2607_v30 = vsel %vm2105_vm10, %v2606_v5, %v2602_v18 }
 0x1d4   :  { %1884 = vadd.xlane.f32.xlu1 %v1883_v37  ;;  %v1780_v52 = vpop.xlane.xlu0 %1779  ;;  %v2224_v44 = vrot.slane %v1921_v41, %v4556_v4 }
 0x1d5   :  { %v1783_v60 = vpop.xlane.xlu1 %1782  ;;  %v1984_v1 = vadd.f32 %v4435_v59, %v1780_v52  ;;  %v2220_v37 = vsel %vm2112_vm11, %v2219_v23, %v2215_v17 }
 0x1d6   :  { %v1985_v55 = vadd.f32 %v4435_v59, %v1783_v60  ;;  %v2225_v25 = vsel %vm2119_vm12, %v2224_v44, %v2220_v37 }
 0x1d7   :  { %1887 = vadd.xlane.f32.xlu0 %v1886_v7  ;;  %v2611_v36 = vrot.slane %v1984_v1, %v4564_v26 }
 0x1d8   :  { %1698 = vadd.xlane.f32.xlu1 %v1697_v47  ;;  %v1594_v29 = vpop.xlane.xlu0 %1593  ;;  %v2616_v20 = vrot.slane %v1985_v55, %v4556_v4 }
 0x1d9   :  { %v1597_v11 = vpop.xlane.xlu1 %1596  ;;  %v1922_v40 = vadd.f32 %v4435_v59, %v1594_v29  ;;  %v2612_v49 = vsel %vm2112_vm11, %v2611_v36, %v2607_v30 }
 0x1da   :  { %v1923_v16 = vadd.f32 %v4435_v59, %v1597_v11  ;;  %v2617_v58 = vsel %vm2119_vm12, %v2616_v20, %v2612_v49 }
 0x1db   :  { %1842 = vadd.xlane.f32.xlu0 %v1841_v54  ;;  %v2229_v42 = vrot.slane %v1922_v40, %v4662_v53 }
 0x1dc   :  { %1890 = vadd.xlane.f32.xlu1 %v1889_v61  ;;  %v1786_v45 = vpop.xlane.xlu0 %1785  ;;  %v2234_v28 = vrot.slane %v1923_v16, %v4601_v33 }
 0x1dd   :  { %v1789_v46 = vpop.xlane.xlu1 %1788  ;;  %v1986_v38 = vadd.f32 %v4435_v59, %v1786_v45  ;;  %v2230_v51 = vsel %vm2126_vm13, %v2229_v42, %v2225_v25 }
 0x1de   :  { %v1987_v14 = vadd.f32 %v4435_v59, %v1789_v46  ;;  %v2235_v47 = vsel %vm2133_vm14, %v2234_v28, %v2230_v51 }
 0x1df   :  { %v2621_v27 = vrot.slane %v1986_v38, %v4662_v53 }
 0x1e0   :  { %v1600_v22 = vpop.xlane.xlu0 %1599  ;;  %v2626_v60 = vrot.slane %v1987_v14, %v4601_v33 }
 0x1e1   :  { %v1603_v50 = vpop.xlane.xlu1 %1602  ;;  %v1924_v12 = vadd.f32 %v4435_v59, %v1600_v22  ;;  %v2622_v39 = vsel %vm2126_vm13, %v2621_v27, %v2617_v58 }
 0x1e2   :  { %v1925_v52 = vadd.f32 %v4435_v59, %v1603_v50  ;;  %v2627_v41 = vsel %vm2133_vm14, %v2626_v60, %v2622_v39 }
 0x1e3   :  { %v2239_v0 = vrot.slane %v1924_v12, %v4721_v48 }
 0x1e4   :  { %v2244_v3 = vrot.slane %v1925_v52, %v4715_v19  ;;  %v1792_v7 = vpop.xlane.xlu0 %1791 }
 0x1e5   :  { %v2240_v62 = vsel %vm2140_vm15, %v2239_v0, %v2235_v47  ;;  %v1795_v43 = vpop.xlane.xlu1 %1794  ;;  %v1988_v6 = vadd.f32 %v4435_v59, %v1792_v7 }
 0x1e6   :  { %v2245_v15 = vsel %vm2147_vm0, %v2244_v3, %v2240_v62  ;;  %v1989_v8 = vadd.f32 %v4435_v59, %v1795_v43 }
 0x1e7   :  { %2247 = vst [vmem:[#allocation3 + $0x1] ss:$8 sm:$0x1] %v2245_v15  ;;  %v2631_v9 = vrot.slane %v1988_v6, %v4721_v48 }
 0x1e8   :  { %v2636_v57 = vrot.slane %v1989_v8, %v4715_v19  ;;  %v1801_v29 = vpop.xlane.xlu0 %1800 }
 0x1e9   :  { %v2632_v23 = vsel %vm2140_vm15, %v2631_v9, %v2627_v41  ;;  %v1609_v1 = vpop.xlane.xlu1 %1608  ;;  %v1991_v40 = vadd.f32 %v4435_v59, %v1801_v29 }
 0x1ea   :  { %v2637_v11 = vsel %vm2147_vm0, %v2636_v57, %v2632_v23  ;;  %v1927_v39 = vadd.f32 %v4435_v59, %v1609_v1 }
 0x1eb   :  { %2639 = vst [vmem:[#allocation3 + $0x5] ss:$8 sm:$0x1] %v2637_v11  ;;  %v2664_v17 = vrot.slane %v1991_v40, %v4439_v63 }
 0x1ec   :  { %v1606_v54 = vpop.xlane.xlu0 %1605  ;;  %v2272_v29 = vrot.slane %v1927_v39, %v4439_v63 }
 0x1ed   :  { %v1798_v5 = vpop.xlane.xlu1 %1797  ;;  %v1926_v60 = vadd.f32 %v4435_v59, %v1606_v54 }
 0x1ee   :  { %v1990_v10 = vadd.f32 %v4435_v59, %v1798_v5 }
 0x1ef   :  { %v2268_v43 = vrot.slane %v1926_v60, %v4455_v13 }
 0x1f0   :  { %v2660_v61 = vrot.slane %v1990_v10, %v4455_v13  ;;  %v1807_v18 = vpop.xlane.xlu0 %1806 }
 0x1f1   :  { %v1615_v44 = vpop.xlane.xlu1 %1614  ;;  %v1993_v45 = vadd.f32 %v4435_v59, %v1807_v18  ;;  %v2273_v40 = vsel %vm2049_vm2, %v2272_v29, %v2268_v43 }
 0x1f2   :  { %v2665_v55 = vsel %vm2049_vm2, %v2664_v17, %v2660_v61  ;;  %v1929_v23 = vadd.f32 %v4435_v59, %v1615_v44 }
 0x1f3   :  { %v2674_v38 = vrot.slane %v1993_v45, %v4466_v24 }
 0x1f4   :  { %v1612_v16 = vpop.xlane.xlu0 %1611 }
 0x1f5   :  { %v1804_v37 = vpop.xlane.xlu1 %1803  ;;  %v1928_v3 = vadd.f32 %v4435_v59, %v1612_v16 }
 0x1f6   :  { %v1992_v36 = vadd.f32 %v4435_v59, %v1804_v37 }
 0x1f7   :  { %v2277_v8 = vrot.slane %v1928_v3, %v4474_v32 }
 0x1f8   :  { %v2669_v42 = vrot.slane %v1992_v36, %v4474_v32  ;;  %v1813_v46 = vpop.xlane.xlu0 %1812 }
 0x1f9   :  { %v1621_v30 = vpop.xlane.xlu1 %1620  ;;  %v1995_v14 = vadd.f32 %v4435_v59, %v1813_v46  ;;  %v2278_v5 = vsel %vm2056_vm3, %v2277_v8, %v2273_v40 }
 0x1fa   :  { %v2670_v20 = vsel %vm2056_vm3, %v2669_v42, %v2665_v55  ;;  %v2282_v55 = vrot.slane %v1929_v23, %v4466_v24  ;;  %v1931_v44 = vadd.f32 %v4435_v59, %v1621_v30 }
 0x1fb   :  { %v2675_v28 = vsel %vm2063_vm4, %v2674_v38, %v2670_v20  ;;  %v2684_v50 = vrot.slane %v1995_v14, %v4477_v34 }
 0x1fc   :  { %v1618_v25 = vpop.xlane.xlu0 %1617  ;;  %v2283_v45 = vsel %vm2063_vm4, %v2282_v55, %v2278_v5 }
 0x1fd   :  { %v1810_v22 = vpop.xlane.xlu1 %1809  ;;  %v1930_v9 = vadd.f32 %v4435_v59, %v1618_v25  ;;  %v2292_v25 = vrot.slane %v1931_v44, %v4477_v34 }
 0x1fe   :  { %v1994_v49 = vadd.f32 %v4435_v59, %v1810_v22 }
 0x1ff   :  { %v2287_v10 = vrot.slane %v1930_v9, %v4480_v35 }
 0x200   :  { %v2679_v51 = vrot.slane %v1994_v49, %v4480_v35  ;;  %v1819_v27 = vpop.xlane.xlu0 %1818 }
 0x201   :  { %v1627_v12 = vpop.xlane.xlu1 %1626  ;;  %v1997_v47 = vadd.f32 %v4435_v59, %v1819_v27  ;;  %v2288_v42 = vsel %vm2070_vm5, %v2287_v10, %v2283_v45 }
 0x202   :  { %v2680_v52 = vsel %vm2070_vm5, %v2679_v51, %v2675_v28  ;;  %v1933_v30 = vadd.f32 %v4435_v59, %v1627_v12  ;;  %v2293_v49 = vsel %vm2077_vm6, %v2292_v25, %v2288_v42 }
 0x203   :  { %v2685_v0 = vsel %vm2077_vm6, %v2684_v50, %v2680_v52  ;;  %v2694_v57 = vrot.slane %v1997_v47, %v4496_v56 }
 0x204   :  { %v1624_v58 = vpop.xlane.xlu0 %1623 }
 0x205   :  { %v1816_v7 = vpop.xlane.xlu1 %1815  ;;  %v1932_v17 = vadd.f32 %v4435_v59, %v1624_v58  ;;  %v2302_v58 = vrot.slane %v1933_v30, %v4496_v56 }
 0x206   :  { %v1996_v62 = vadd.f32 %v4435_v59, %v1816_v7 }
 0x207   :  { %v2297_v46 = vrot.slane %v1932_v17, %v4502_v2 }
 0x208   :  { %v2689_v6 = vrot.slane %v1996_v62, %v4502_v2  ;;  %v1825_v15 = vpop.xlane.xlu0 %1824 }
 0x209   :  { %v1633_v41 = vpop.xlane.xlu1 %1632  ;;  %v1999_v61 = vadd.f32 %v4435_v59, %v1825_v15  ;;  %v2298_v27 = vsel %vm2084_vm7, %v2297_v46, %v2293_v49 }
 0x20a   :  { %v2690_v1 = vsel %vm2084_vm7, %v2689_v6, %v2685_v0  ;;  %v1935_v12 = vadd.f32 %v4435_v59, %v1633_v41  ;;  %v2303_v47 = vsel %vm2091_vm8, %v2302_v58, %v2298_v27 }
 0x20b   :  { %v2695_v11 = vsel %vm2091_vm8, %v2694_v57, %v2690_v1  ;;  %v2704_v38 = vrot.slane %v1999_v61, %v4518_v21 }
 0x20c   :  { %v1630_v54 = vpop.xlane.xlu0 %1629  ;;  %v2312_v8 = vrot.slane %v1935_v12, %v4518_v21 }
 0x20d   :  { %v1822_v18 = vpop.xlane.xlu1 %1821  ;;  %v1934_v20 = vadd.f32 %v4435_v59, %v1630_v54 }
 0x20e   :  { %v1998_v16 = vadd.f32 %v4435_v59, %v1822_v18 }
 0x20f   :  { %v2307_v50 = vrot.slane %v1934_v20, %v4526_v31 }
 0x210   :  { %v2699_v37 = vrot.slane %v1998_v16, %v4526_v31  ;;  %v1831_v36 = vpop.xlane.xlu0 %1830 }
 0x211   :  { %v1639_v28 = vpop.xlane.xlu1 %1638  ;;  %v2001_v52 = vadd.f32 %v4435_v59, %v1831_v36  ;;  %v2308_v62 = vsel %vm2098_vm9, %v2307_v50, %v2303_v47 }
 0x212   :  { %v2700_v14 = vsel %vm2098_vm9, %v2699_v37, %v2695_v11  ;;  %v1937_v9 = vadd.f32 %v4435_v59, %v1639_v28  ;;  %v2313_v29 = vsel %vm2105_vm10, %v2312_v8, %v2308_v62 }
 0x213   :  { %v2705_v22 = vsel %vm2105_vm10, %v2704_v38, %v2700_v14  ;;  %v2714_v43 = vrot.slane %v2001_v52, %v4556_v4 }
 0x214   :  { %v1636_v51 = vpop.xlane.xlu0 %1635  ;;  %v2322_v5 = vrot.slane %v1937_v9, %v4556_v4 }
 0x215   :  { %v1828_v0 = vpop.xlane.xlu1 %1827  ;;  %v1936_v60 = vadd.f32 %v4435_v59, %v1636_v51 }
 0x216   :  { %v2000_v3 = vadd.f32 %v4435_v59, %v1828_v0 }
 0x217   :  { %v2317_v6 = vrot.slane %v1936_v60, %v4564_v26 }
 0x218   :  { %v2709_v7 = vrot.slane %v2000_v3, %v4564_v26  ;;  %v1837_v39 = vpop.xlane.xlu0 %1836 }
 0x219   :  { %v1645_v15 = vpop.xlane.xlu1 %1644  ;;  %v2318_v1 = vsel %vm2112_vm11, %v2317_v6, %v2313_v29  ;;  %v2003_v11 = vadd.f32 %v4435_v59, %v1837_v39 }
 0x21a   :  { %v2710_v57 = vsel %vm2112_vm11, %v2709_v7, %v2705_v22  ;;  %v1939_v10 = vadd.f32 %v4435_v59, %v1645_v15  ;;  %v2323_v55 = vsel %vm2119_vm12, %v2322_v5, %v2318_v1 }
 0x21b   :  { %v2715_v41 = vsel %vm2119_vm12, %v2714_v43, %v2710_v57  ;;  %v2724_v16 = vrot.slane %v2003_v11, %v4601_v33 }
 0x21c   :  { %v1642_v23 = vpop.xlane.xlu0 %1641  ;;  %v2332_v42 = vrot.slane %v1939_v10, %v4601_v33 }
 0x21d   :  { %v1834_v40 = vpop.xlane.xlu1 %1833  ;;  %v1938_v54 = vadd.f32 %v4435_v59, %v1642_v23 }
 0x21e   :  { %v2002_v17 = vadd.f32 %v4435_v59, %v1834_v40 }
 0x21f   :  { %v2327_v61 = vrot.slane %v1938_v54, %v4662_v53 }
 0x220   :  { %v2719_v18 = vrot.slane %v2002_v17, %v4662_v53  ;;  %v1648_v44 = vpop.xlane.xlu0 %1647 }
 0x221   :  { %v2328_v45 = vsel %vm2126_vm13, %v2327_v61, %v2323_v55  ;;  %v1651_v37 = vpop.xlane.xlu1 %1650  ;;  %v1940_v36 = vadd.f32 %v4435_v59, %v1648_v44 }
 0x222   :  { %v2720_v46 = vsel %vm2126_vm13, %v2719_v18, %v2715_v41  ;;  %v1941_v38 = vadd.f32 %v4435_v59, %v1651_v37  ;;  %v2333_v30 = vsel %vm2133_vm14, %v2332_v42, %v2328_v45 }
 0x223   :  { %v2337_v20 = vrot.slane %v1940_v36, %v4721_v48  ;;  %v5080_v28 = vsel %vm2133_vm14, %v2724_v16, %v2720_v46 }
 0x224   :  { %v2342_v25 = vrot.slane %v1941_v38, %v4715_v19  ;;  %v1849_v14 = vpop.xlane.xlu0 %1848 }
 0x225   :  { %v2338_v22 = vsel %vm2140_vm15, %v2337_v20, %v2333_v30  ;;  %v1840_v49 = vpop.xlane.xlu1 %1839  ;;  %v2007_v5 = vadd.f32 %v4435_v59, %v1849_v14 }
 0x226   :  { %v2343_v51 = vsel %vm2147_vm0, %v2342_v25, %v2338_v22 }
 0x227   :  { %2345 = vst [vmem:[#allocation3 + $0x2] ss:$8 sm:$0x1] %v2343_v51  ;;  %v2762_v20 = vrot.slane %v2007_v5, %v4439_v63  ;;  %v5108_v51 = vadd.f32 %v4435_v59, %v1840_v49 }
 0x228   :  { %v1654_v27 = vpop.xlane.xlu0 %1653 }
 0x229   :  { %v1657_v50 = vpop.xlane.xlu1 %1656  ;;  %v1942_v1 = vadd.f32 %v4435_v59, %v1654_v27 }
 0x22a   :  { %v1943_v23 = vadd.f32 %v4435_v59, %v1657_v50 }
 0x22b   :  { %v2366_v45 = vrot.slane %v1942_v1, %v4455_v13 }
 0x22c   :  { %v1660_v52 = vpop.xlane.xlu0 %1659  ;;  %v2370_v16 = vrot.slane %v1943_v23, %v4439_v63 }
 0x22d   :  { %v1846_v0 = vpop.xlane.xlu1 %1845  ;;  %v1944_v40 = vadd.f32 %v4435_v59, %v1660_v52 }
 0x22e   :  { %v2006_v11 = vadd.f32 %v4435_v59, %v1846_v0  ;;  %v2371_v52 = vsel %vm2049_vm2, %v2370_v16, %v2366_v45 }
 0x22f   :  { %v2375_v42 = vrot.slane %v1944_v40, %v4474_v32 }
 0x230   :  { %v1852_v60 = vpop.xlane.xlu0 %1851  ;;  %v2758_v37 = vrot.slane %v2006_v11, %v4455_v13 }
 0x231   :  { %v1663_v58 = vpop.xlane.xlu1 %1662  ;;  %v2008_v54 = vadd.f32 %v4435_v59, %v1852_v60  ;;  %v2376_v60 = vsel %vm2056_vm3, %v2375_v42, %v2371_v52 }
 0x232   :  { %v1945_v10 = vadd.f32 %v4435_v59, %v1663_v58  ;;  %v2763_v63 = vsel %vm2049_vm2, %v2762_v20, %v2758_v37 }
 0x233   :  { %v2767_v46 = vrot.slane %v2008_v54, %v4474_v32 }
 0x234   :  { %v1666_v12 = vpop.xlane.xlu0 %1665  ;;  %v2380_v25 = vrot.slane %v1945_v10, %v4466_v24 }
 0x235   :  { %v1855_v3 = vpop.xlane.xlu1 %1854  ;;  %v1946_v18 = vadd.f32 %v4435_v59, %v1666_v12  ;;  %v2768_v49 = vsel %vm2056_vm3, %v2767_v46, %v2763_v63 }
 0x236   :  { %v2009_v17 = vadd.f32 %v4435_v59, %v1855_v3 }
 0x237   :  { %v2385_v13 = vrot.slane %v1946_v18, %v4480_v35 }
 0x238   :  { %v1858_v47 = vpop.xlane.xlu0 %1857  ;;  %v2772_v30 = vrot.slane %v2009_v17, %v4466_v24 }
 0x239   :  { %v1669_v7 = vpop.xlane.xlu1 %1668  ;;  %v2010_v55 = vadd.f32 %v4435_v59, %v1858_v47 }
 0x23a   :  { %v1947_v36 = vadd.f32 %v4435_v59, %v1669_v7  ;;  %v2773_v3 = vsel %vm2063_vm4, %v2772_v30, %v2768_v49 }
 0x23b   :  { %v2777_v27 = vrot.slane %v2010_v55, %v4480_v35  ;;  %v2381_v35 = vsel %vm2063_vm4, %v2380_v25, %v2376_v60 }
 0x23c   :  { %v1672_v39 = vpop.xlane.xlu0 %1671  ;;  %v2390_v0 = vrot.slane %v1947_v36, %v4477_v34 }
 0x23d   :  { %v1861_v62 = vpop.xlane.xlu1 %1860  ;;  %v1948_v38 = vadd.f32 %v4435_v59, %v1672_v39 }
 0x23e   :  { %v2011_v14 = vadd.f32 %v4435_v59, %v1861_v62  ;;  %v2386_v62 = vsel %vm2070_vm5, %v2385_v13, %v2381_v35 }
 0x23f   :  { %v2395_v58 = vrot.slane %v1948_v38, %v4502_v2 }
 0x240   :  { %v1864_v43 = vpop.xlane.xlu0 %1863  ;;  %v2782_v47 = vrot.slane %v2011_v14, %v4477_v34 }
 0x241   :  { %v1675_v6 = vpop.xlane.xlu1 %1674  ;;  %v2012_v32 = vadd.f32 %v4435_v59, %v1864_v43  ;;  %v2778_v43 = vsel %vm2070_vm5, %v2777_v27, %v2773_v3 }
 0x242   :  { %v1949_v24 = vadd.f32 %v4435_v59, %v1675_v6 }
 0x243   :  { %v2787_v6 = vrot.slane %v2012_v32, %v4502_v2  ;;  %v2783_v2 = vsel %vm2077_vm6, %v2782_v47, %v2778_v43 }
 0x244   :  { %v1678_v15 = vpop.xlane.xlu0 %1677  ;;  %v2400_v11 = vrot.slane %v1949_v24, %v4496_v56  ;;  %v2729_v24 = vrot.slane %v5108_v51, %v4721_v48 }
 0x245   :  { %v1867_v8 = vpop.xlane.xlu1 %1866  ;;  %v1950_v12 = vadd.f32 %v4435_v59, %v1678_v15  ;;  %v2391_v15 = vsel %vm2077_vm6, %v2390_v0, %v2386_v62 }
 0x246   :  { %v2013_v40 = vadd.f32 %v4435_v59, %v1867_v8  ;;  %v2788_v8 = vsel %vm2084_vm7, %v2787_v6, %v2783_v2 }
 0x247   :  { %v2405_v54 = vrot.slane %v1950_v12, %v4526_v31 }
 0x248   :  { %v1870_v9 = vpop.xlane.xlu0 %1869  ;;  %v2792_v36 = vrot.slane %v2013_v40, %v4496_v56 }
 0x249   :  { %v1681_v57 = vpop.xlane.xlu1 %1680  ;;  %v2014_v5 = vadd.f32 %v4435_v59, %v1870_v9 }
 0x24a   :  { %v1951_v7 = vadd.f32 %v4435_v59, %v1681_v57  ;;  %v2396_v57 = vsel %vm2084_vm7, %v2395_v58, %v2391_v15  ;;  %v2793_v52 = vsel %vm2091_vm8, %v2792_v36, %v2788_v8 }
 0x24b   :  { %v2401_v37 = vsel %vm2091_vm8, %v2400_v11, %v2396_v57  ;;  %v2797_v38 = vrot.slane %v2014_v5, %v4526_v31 }
 0x24c   :  { %v1684_v41 = vpop.xlane.xlu0 %1683  ;;  %v2406_v46 = vsel %vm2098_vm9, %v2405_v54, %v2401_v37 }
 0x24d   :  { %v1873_v29 = vpop.xlane.xlu1 %1872  ;;  %v1952_v23 = vadd.f32 %v4435_v59, %v1684_v41  ;;  %v2410_v41 = vrot.slane %v1951_v7, %v4518_v21  ;;  %v2798_v60 = vsel %vm2098_vm9, %v2797_v38, %v2793_v52 }
 0x24e   :  { %v2015_v17 = vadd.f32 %v4435_v59, %v1873_v29 }
 0x250   :  { %v1876_v61 = vpop.xlane.xlu0 %1875  ;;  %v2802_v30 = vrot.slane %v2015_v17, %v4518_v21 }
 0x251   :  { %v1687_v44 = vpop.xlane.xlu1 %1686  ;;  %v2016_v16 = vadd.f32 %v4435_v59, %v1876_v61  ;;  %v2411_v61 = vsel %vm2105_vm10, %v2410_v41, %v2406_v46 }
 0x252   :  { %v1953_v34 = vadd.f32 %v4435_v59, %v1687_v44  ;;  %v2415_v44 = vrot.slane %v1952_v23, %v4564_v26  ;;  %v2803_v58 = vsel %vm2105_vm10, %v2802_v30, %v2798_v60 }
 0x253   :  { %v2807_v27 = vrot.slane %v2016_v16, %v4564_v26 }
 0x254   :  { %v1690_v22 = vpop.xlane.xlu0 %1689  ;;  %v2420_v42 = vrot.slane %v1953_v34, %v4556_v4  ;;  %v2416_v13 = vsel %vm2112_vm11, %v2415_v44, %v2411_v61 }
 0x255   :  { %v1879_v50 = vpop.xlane.xlu1 %1878  ;;  %v1954_v10 = vadd.f32 %v4435_v59, %v1690_v22  ;;  %v2808_v47 = vsel %vm2112_vm11, %v2807_v27, %v2803_v58 }
 0x256   :  { %v2017_v29 = vadd.f32 %v4435_v59, %v1879_v50  ;;  %v2421_v63 = vsel %vm2119_vm12, %v2420_v42, %v2416_v13 }
 0x257   :  { %v2425_v20 = vrot.slane %v1954_v10, %v4662_v53 }
 0x258   :  { %v1882_v39 = vpop.xlane.xlu0 %1881  ;;  %v2812_v21 = vrot.slane %v2017_v29, %v4556_v4 }
 0x259   :  { %v1693_v1 = vpop.xlane.xlu1 %1692  ;;  %v2018_v25 = vadd.f32 %v4435_v59, %v1882_v39  ;;  %v2426_v26 = vsel %vm2126_vm13, %v2425_v20, %v2421_v63 }
 0x25a   :  { %v1955_v18 = vadd.f32 %v4435_v59, %v1693_v1  ;;  %v2730_v1 = vsel %vm2140_vm15, %v2729_v24, %v5080_v28 }
 0x25b   :  { %v2817_v49 = vrot.slane %v2018_v25, %v4662_v53  ;;  %v2813_v53 = vsel %vm2119_vm12, %v2812_v21, %v2808_v47 }
 0x25c   :  { %v1696_v55 = vpop.xlane.xlu0 %1695  ;;  %v2430_v14 = vrot.slane %v1955_v18, %v4601_v33 }
 0x25d   :  { %v1885_v45 = vpop.xlane.xlu1 %1884  ;;  %v1956_v9 = vadd.f32 %v4435_v59, %v1696_v55 }
 0x25e   :  { %v2019_v56 = vadd.f32 %v4435_v59, %v1885_v45  ;;  %v2431_v12 = vsel %vm2133_vm14, %v2430_v14, %v2426_v26 }
 0x25f   :  { %v2435_v32 = vrot.slane %v1956_v9, %v4721_v48 }
 0x260   :  { %v1888_v22 = vpop.xlane.xlu0 %1887  ;;  %v2822_v35 = vrot.slane %v2019_v56, %v4601_v33  ;;  %v2818_v33 = vsel %vm2126_vm13, %v2817_v49, %v2813_v53 }
 0x261   :  { %v1699_v31 = vpop.xlane.xlu1 %1698  ;;  %v2020_v50 = vadd.f32 %v4435_v59, %v1888_v22  ;;  %v2436_v7 = vsel %vm2140_vm15, %v2435_v32, %v2431_v12 }
 0x262   :  { %v1957_v0 = vadd.f32 %v4435_v59, %v1699_v31 }
 0x263   :  { %v2827_v51 = vrot.slane %v2020_v50, %v4721_v48  ;;  %v2823_v48 = vsel %vm2133_vm14, %v2822_v35, %v2818_v33 }
 0x264   :  { %v2440_v3 = vrot.slane %v1957_v0, %v4715_v19  ;;  %v1843_v4 = vpop.xlane.xlu0 %1842 }
 0x265   :  { %v1891_v39 = vpop.xlane.xlu1 %1890  ;;  %v2005_v62 = vadd.f32 %v4435_v59, %v1843_v4  ;;  %v2828_v11 = vsel %vm2140_vm15, %v2827_v51, %v2823_v48 }
 0x266   :  { %v2441_v43 = vsel %vm2147_vm0, %v2440_v3, %v2436_v7  ;;  %v2021_v6 = vadd.f32 %v4435_v59, %v1891_v39 }
 0x267   :  { %2443 = vst [vmem:[#allocation3 + $0x3] ss:$8 sm:$0x1] %v2441_v43  ;;  %v2734_v23 = vrot.slane %v2005_v62, %v4715_v19 }
 0x268   :  { %v2832_v15 = vrot.slane %v2021_v6, %v4715_v19 }
 0x269   :  { %v2735_v40 = vsel %vm2147_vm0, %v2734_v23, %v2730_v1 }
 0x26a   :  { %v2833_v59 = vsel %vm2147_vm0, %v2832_v15, %v2828_v11  ;;  %2737 = vst [vmem:[#allocation3 + $0x6] ss:$8 sm:$0x1] %v2735_v40 }
 0x26b   :  { %2835 = vst [vmem:[#allocation3 + $0x7] ss:$8 sm:$0x1] %v2833_v59 }
 0x26c   :  { %3593 = shalt.err (!%p3590_p4)
}
 0x26d   :  { %2846 = dma.vmem_to_hbm [thread:$0]  %s2844_s21, 128, %s5197_s4, [#allocation4]  }
 0x26e   :  { %3602 = dma.done.wait [#allocation4], 128  }
 0x26f   :  { %3603 = vsyncadd [#allocation4], 4294967168 }
 0x270   :  { %2850 = vsyncpa [#allocation4], 1 }

</bundles_post_ra>
